<compile_context>
chip_gen: v6e
topology: v6e:2x2x1
jax: 0.10.0
libtpu: 0.0.40
codegen_flags: <defaults>
</compile_context>

<pallas_src>
import functools

import jax
import jax.numpy as jnp
import numpy as np
from jax.experimental import pallas as pl
from jax.experimental.pallas import tpu as pltpu


def _layer_norm(v, gamma, beta, eps):
    # v: (T, D) f32, gamma/beta: (1, D) f32
    mu = jnp.mean(v, axis=-1, keepdims=True)
    var = jnp.mean((v - mu) ** 2, axis=-1, keepdims=True)
    return (v - mu) * jax.lax.rsqrt(var + eps) * gamma + beta


def _encoder_layer_kernel(
    xq_ref, xf_ref,
    wq_ref, bq_ref, wkv_ref, bkv_ref, wo3_ref, bo_ref,
    w1_ref, b1_ref, w2_ref, b2_ref,
    g1_ref, be1_ref, g2_ref, be2_ref,
    o_ref,
    k_sc, v_sc, q_sc,
    *, d_model, nhead, eps, compute_dtype,
):
    hd = d_model // nhead
    qt = pl.program_id(1)

    # ---- K/V projection for the full sequence: once per batch element ----
    @pl.when(qt == 0)
    def _project_kv():
        xf = xf_ref[...].astype(compute_dtype)                            # (S, D)
        kv = jnp.dot(xf, wkv_ref[...],
                     preferred_element_type=jnp.float32) + bkv_ref[...]   # (S, 2D) f32
        for h in range(nhead):
            lo = h * hd
            k_sc[h] = kv[:, lo:lo + hd].astype(compute_dtype)
            v_sc[h] = kv[:, d_model + lo:d_model + lo + hd].astype(compute_dtype)

    # ---- Q projection for this query tile (scale pre-folded into Wq/bq) ---
    xq = xq_ref[...]                                                      # (tq, D) f32
    q = jnp.dot(xq.astype(compute_dtype), wq_ref[...],
                preferred_element_type=jnp.float32) + bq_ref[...]         # (tq, D) f32
    for h in range(nhead):
        lo = h * hd
        q_sc[h] = q[:, lo:lo + hd].astype(compute_dtype)

    # ---- head-batched attention ------------------------------------------
    q3 = q_sc[...]                       # (H, tq, hd) bf16
    k3 = k_sc[...]                       # (H, S,  hd) bf16
    v3 = v_sc[...]                       # (H, S,  hd) bf16
    s = jnp.einsum("hqd,hkd->hqk", q3, k3,
                   preferred_element_type=jnp.float32)                    # (H, tq, S) f32
    s = s - jnp.max(s, axis=-1, keepdims=True)
    p = jnp.exp(s)
    p = p * pl.reciprocal(jnp.sum(p, axis=-1, keepdims=True), approx=True)
    attn3 = jnp.einsum("hqk,hkd->hqd", p.astype(compute_dtype), v3,
                       preferred_element_type=jnp.float32)                # (H, tq, hd) f32

    # output projection folded per head: out = sum_h attn_h @ Wo_h + bo
    proj = jnp.einsum("hqd,hdo->hqo", attn3.astype(compute_dtype), wo3_ref[...],
                      preferred_element_type=jnp.float32)                 # (H, tq, D) f32
    attn_out = jnp.sum(proj, axis=0) + bo_ref[...]                        # (tq, D) f32

    # ---- residual + LayerNorm 1 (f32) -------------------------------------
    out1 = _layer_norm(xq + attn_out, g1_ref[...], be1_ref[...], eps)

    # ---- feed-forward (bf16 matmuls, f32 accumulate / elementwise) --------
    ff = jnp.dot(out1.astype(compute_dtype), w1_ref[...],
                 preferred_element_type=jnp.float32) + b1_ref[...]        # (tq, F)
    ff = jnp.maximum(ff, 0.0)
    ff = jnp.dot(ff.astype(compute_dtype), w2_ref[...],
                 preferred_element_type=jnp.float32) + b2_ref[...]        # (tq, D)

    # ---- residual + LayerNorm 2 -------------------------------------------
    o_ref[...] = _layer_norm(out1 + ff, g2_ref[...], be2_ref[...], eps)


def transformer_encoder_layer(x, params, *, d_model, nhead, eps=1e-5,
                              compute_dtype=jnp.bfloat16):
    """x: (B, S, D) float32. params follow the PyTorch layer's layout."""
    B, S, D = x.shape
    assert D == d_model and d_model % nhead == 0
    hd = d_model // nhead
    F = params["w1"].shape[0]
    scale = 1.0 / float(np.sqrt(hd))

    # --- pre-transpose / re-layout weights OUTSIDE the kernel (one-time) ---
    wqkv, bqkv = params["wqkv"], params["bqkv"]
    # Fold the attention scale into Wq / bq so the kernel never multiplies.
    wq_t = (wqkv[:D].T * scale).astype(compute_dtype)          # (D, D)
    bq = bqkv[:, :D] * scale                                   # (1, D)  f32
    wkv_t = wqkv[D:].T.astype(compute_dtype)                   # (D, 2D)  [K | V]
    bkv = bqkv[:, D:]                                          # (1, 2D) f32
    # Wo.T split head-major: wo3[h] = Wo.T[h*hd:(h+1)*hd, :]
    wo3 = params["wo"].T.reshape(nhead, hd, D).astype(compute_dtype)
    bo = params["bo"]
    w1_t = params["w1"].T.astype(compute_dtype)                # (D, F)
    b1 = params["b1"]
    w2_t = params["w2"].T.astype(compute_dtype)                # (F, D)
    b2 = params["b2"]
    g1, be1 = params["ln1_g"], params["ln1_b"]
    g2, be2 = params["ln2_g"], params["ln2_b"]

    # --- query-tile size (tq must divide S) ---------------------------------
    if S > 256 and S % 256 == 0:
        tq = 256
    elif S > 128 and S % 128 == 0:
        tq = 128
    else:
        tq = S
    n_qt = S // tq

    args = (x, x, wq_t, bq, wkv_t, bkv, wo3, bo,
            w1_t, b1, w2_t, b2, g1, be1, g2, be2)

    kernel = functools.partial(
        _encoder_layer_kernel, d_model=d_model, nhead=nhead, eps=eps,
        compute_dtype=compute_dtype)

    x_q_spec = pl.BlockSpec((pl.Squeezed(), tq, D), lambda b, q: (b, q, 0))
    x_f_spec = pl.BlockSpec((pl.Squeezed(), S, D), lambda b, q: (b, 0, 0))
    out_spec = pl.BlockSpec((pl.Squeezed(), tq, D), lambda b, q: (b, q, 0))

    scratch_shapes = [
        pltpu.VMEM((nhead, S, hd), compute_dtype),    # K, head-major
        pltpu.VMEM((nhead, S, hd), compute_dtype),    # V, head-major
        pltpu.VMEM((nhead, tq, hd), compute_dtype),   # Q tile, head-major
    ]

    # --- VMEM budget + cost estimate ----------------------------------------
    bytes_params = sum(int(np.prod(a.shape)) * a.dtype.itemsize for a in args[2:])
    bytes_blocks = (tq * D + S * D + tq * D) * 4 * 2          # x tiles + out (dbl buffered)
    bytes_scratch = (2 * nhead * S * hd + nhead * tq * hd) * jnp.dtype(compute_dtype).itemsize
    bytes_interm = 4 * (nhead * tq * S + nhead * tq * D + tq * F + 3 * tq * D + S * 2 * D)
    working = 2 * bytes_params + bytes_blocks + bytes_scratch + bytes_interm
    vmem_limit = int(min(128 * 1024 * 1024, max(32 * 1024 * 1024, 2 * working)))

    flops = B * (2 * S * D * (3 * D)      # QKV projections
                 + 4 * S * S * D          # scores + P@V
                 + 2 * S * D * D          # output projection
                 + 4 * S * D * F)         # FFN
    cost = pl.CostEstimate(flops=int(flops),
                           transcendentals=int(B * nhead * S * S),
                           bytes_accessed=int(2 * x.size * 4 + bytes_params))

    def _param_spec(p, single_buffer):
        nd = p.ndim
        idx = lambda b, q, _nd=nd: (0,) * _nd
        if single_buffer:
            return pl.BlockSpec(p.shape, idx, pipeline_mode=pl.Buffered(1))
        return pl.BlockSpec(p.shape, idx)

    def _build(single_buffer_weights):
        param_specs = [_param_spec(p, single_buffer_weights) for p in args[2:]]
        return pl.pallas_call(
            kernel,
            out_shape=jax.ShapeDtypeStruct((B, S, D), jnp.float32),
            grid_spec=pltpu.PrefetchScalarGridSpec(
                num_scalar_prefetch=0,
                grid=(B, n_qt),
                in_specs=[x_q_spec, x_f_spec] + param_specs,
                out_specs=out_spec,
                scratch_shapes=scratch_shapes,
            ),
            compiler_params=pltpu.CompilerParams(
                dimension_semantics=("parallel", "arbitrary"),
                vmem_limit_bytes=vmem_limit,
            ),
            cost_estimate=cost,
        )

    try:
        return _build(True)(*args)
    except Exception:
        # Fallback if this JAX build rejects single-buffered (Buffered(1)) specs.
        return _build(False)(*args)


def _reference(x, params, *, d_model, nhead, eps=1e-5):
    """Pure-JAX f32 reference of the same forward pass (for validation)."""
    hd = d_model // nhead
    scale = 1.0 / np.sqrt(hd)

    def ln(v, g, b):
        mu = jnp.mean(v, axis=-1, keepdims=True)
        var = jnp.mean((v - mu) ** 2, axis=-1, keepdims=True)
        return (v - mu) / jnp.sqrt(var + eps) * g + b

    B, S, D = x.shape
    qkv = x @ params["wqkv"].T + params["bqkv"]
    q, k, v = jnp.split(qkv, 3, axis=-1)
    q = q.reshape(B, S, nhead, hd).transpose(0, 2, 1, 3)
    k = k.reshape(B, S, nhead, hd).transpose(0, 2, 1, 3)
    v = v.reshape(B, S, nhead, hd).transpose(0, 2, 1, 3)
    s = jnp.einsum("bhqd,bhkd->bhqk", q, k) * scale
    p = jax.nn.softmax(s, axis=-1)
    a = jnp.einsum("bhqk,bhkd->bhqd", p, v)
    a = a.transpose(0, 2, 1, 3).reshape(B, S, D)
    a = a @ params["wo"].T + params["bo"]
    out1 = ln(x + a, params["ln1_g"], params["ln1_b"])
    ff = jax.nn.relu(out1 @ params["w1"].T + params["b1"])
    ff = ff @ params["w2"].T + params["b2"]
    return ln(out1 + ff, params["ln2_g"], params["ln2_b"])


def _init_params(key, d_model, nhead, dim_feedforward):
    ks = jax.random.split(key, 6)
    scale_in = 1.0 / np.sqrt(d_model)
    scale_ff = 1.0 / np.sqrt(dim_feedforward)
    return {
        "wqkv": jax.random.uniform(ks[0], (3 * d_model, d_model), jnp.float32,
                                   -scale_in, scale_in),
        "bqkv": jnp.zeros((1, 3 * d_model), jnp.float32),
        "wo": jax.random.uniform(ks[1], (d_model, d_model), jnp.float32,
                                 -scale_in, scale_in),
        "bo": jnp.zeros((1, d_model), jnp.float32),
        "w1": jax.random.uniform(ks[2], (dim_feedforward, d_model), jnp.float32,
                                 -scale_in, scale_in),
        "b1": jax.random.uniform(ks[3], (1, dim_feedforward), jnp.float32,
                                 -scale_in, scale_in),
        "w2": jax.random.uniform(ks[4], (d_model, dim_feedforward), jnp.float32,
                                 -scale_ff, scale_ff),
        "b2": jax.random.uniform(ks[5], (1, d_model), jnp.float32,
                                 -scale_ff, scale_ff),
        "ln1_g": jnp.ones((1, d_model), jnp.float32),
        "ln1_b": jnp.zeros((1, d_model), jnp.float32),
        "ln2_g": jnp.ones((1, d_model), jnp.float32),
        "ln2_b": jnp.zeros((1, d_model), jnp.float32),
    }


if __name__ == "__main__":
    d_model, nhead, dim_ff = 32, 4, 64
    B, S = 2, 8

    key = jax.random.PRNGKey(0)
    kx, kp = jax.random.split(key)
    x = jax.random.normal(kx, (B, S, d_model), jnp.float32)
    params = _init_params(kp, d_model, nhead, dim_ff)

    out = transformer_encoder_layer(x, params, d_model=d_model, nhead=nhead)
    out = jax.block_until_ready(out)

    ref = jax.block_until_ready(
        _reference(x, params, d_model=d_model, nhead=nhead)
    )
    # bf16 matmuls with f32 accumulation -> compare against f32 reference with
    # a mixed-precision tolerance.
    np.testing.assert_allclose(np.asarray(out), np.asarray(ref),
                               rtol=2e-2, atol=2e-2)
    print("KERNEL_OK")
</pallas_src>

<mosaic_0001>
module attributes {stable_mosaic.version = 11 : i64} {
  func.func @_encoder_layer_kernel(%arg0: i32, %arg1: i32, %arg2: memref<1x8x32xf32, #tpu.memory_space<vmem>>, %arg3: memref<1x8x32xf32, #tpu.memory_space<vmem>>, %arg4: memref<32x32xbf16, #tpu.memory_space<vmem>>, %arg5: memref<1x32xf32, #tpu.memory_space<vmem>>, %arg6: memref<32x64xbf16, #tpu.memory_space<vmem>>, %arg7: memref<1x64xf32, #tpu.memory_space<vmem>>, %arg8: memref<4x8x32xbf16, #tpu.memory_space<vmem>>, %arg9: memref<1x32xf32, #tpu.memory_space<vmem>>, %arg10: memref<32x64xbf16, #tpu.memory_space<vmem>>, %arg11: memref<1x64xf32, #tpu.memory_space<vmem>>, %arg12: memref<64x32xbf16, #tpu.memory_space<vmem>>, %arg13: memref<1x32xf32, #tpu.memory_space<vmem>>, %arg14: memref<1x32xf32, #tpu.memory_space<vmem>>, %arg15: memref<1x32xf32, #tpu.memory_space<vmem>>, %arg16: memref<1x32xf32, #tpu.memory_space<vmem>>, %arg17: memref<1x32xf32, #tpu.memory_space<vmem>>, %arg18: memref<1x8x32xf32, #tpu.memory_space<vmem>>, %arg19: memref<4x8x8xbf16, #tpu.memory_space<vmem>>, %arg20: memref<4x8x8xbf16, #tpu.memory_space<vmem>>, %arg21: memref<4x8x8xbf16, #tpu.memory_space<vmem>>) attributes {dimension_semantics = [#tpu.dimension_semantics<parallel>, #tpu.dimension_semantics<arbitrary>], iteration_bounds = array<i64: 2, 1>, scalar_prefetch = 0 : i64, scratch_operands = 3 : i64, tpu.core_type = #tpu.core_type<tc>, window_params = [{transform_indices = @transform_0, window_bounds = array<i64: 1, 8, 32>}, {transform_indices = @transform_1, window_bounds = array<i64: 1, 8, 32>}, {pipeline_mode = #tpu.pipeline_mode<synchronous>, transform_indices = @transform_2, window_bounds = array<i64: 32, 32>}, {pipeline_mode = #tpu.pipeline_mode<synchronous>, transform_indices = @transform_3, window_bounds = array<i64: 1, 32>}, {pipeline_mode = #tpu.pipeline_mode<synchronous>, transform_indices = @transform_4, window_bounds = array<i64: 32, 64>}, {pipeline_mode = #tpu.pipeline_mode<synchronous>, transform_indices = @transform_5, window_bounds = array<i64: 1, 64>}, {pipeline_mode = #tpu.pipeline_mode<synchronous>, transform_indices = @transform_6, window_bounds = array<i64: 4, 8, 32>}, {pipeline_mode = #tpu.pipeline_mode<synchronous>, transform_indices = @transform_7, window_bounds = array<i64: 1, 32>}, {pipeline_mode = #tpu.pipeline_mode<synchronous>, transform_indices = @transform_8, window_bounds = array<i64: 32, 64>}, {pipeline_mode = #tpu.pipeline_mode<synchronous>, transform_indices = @transform_9, window_bounds = array<i64: 1, 64>}, {pipeline_mode = #tpu.pipeline_mode<synchronous>, transform_indices = @transform_10, window_bounds = array<i64: 64, 32>}, {pipeline_mode = #tpu.pipeline_mode<synchronous>, transform_indices = @transform_11, window_bounds = array<i64: 1, 32>}, {pipeline_mode = #tpu.pipeline_mode<synchronous>, transform_indices = @transform_12, window_bounds = array<i64: 1, 32>}, {pipeline_mode = #tpu.pipeline_mode<synchronous>, transform_indices = @transform_13, window_bounds = array<i64: 1, 32>}, {pipeline_mode = #tpu.pipeline_mode<synchronous>, transform_indices = @transform_14, window_bounds = array<i64: 1, 32>}, {pipeline_mode = #tpu.pipeline_mode<synchronous>, transform_indices = @transform_15, window_bounds = array<i64: 1, 32>}, {transform_indices = @transform_16, window_bounds = array<i64: 1, 8, 32>}]} {
    %c0_i32 = arith.constant 0 : i32
    %0 = arith.cmpi eq, %arg1, %c0_i32 : i32
    %1 = arith.extui %0 : i1 to i32
    %c0_i32_0 = arith.constant 0 : i32
    %2 = arith.cmpi ne, %1, %c0_i32_0 : i32
    scf.if %2 {
      %c0_68 = arith.constant 0 : index
      %c0_69 = arith.constant 0 : index
      %c0_70 = arith.constant 0 : index
      %121 = vector.load %arg3[%c0_68, %c0_69, %c0_70] : memref<1x8x32xf32, #tpu.memory_space<vmem>>, vector<1x8x32xf32>
      %122 = vector.shape_cast %121 : vector<1x8x32xf32> to vector<8x32xf32>
      %123 = arith.truncf %122 : vector<8x32xf32> to vector<8x32xbf16>
      %c0_71 = arith.constant 0 : index
      %c0_72 = arith.constant 0 : index
      %124 = vector.load %arg6[%c0_71, %c0_72] : memref<32x64xbf16, #tpu.memory_space<vmem>>, vector<32x64xbf16>
      %cst_73 = arith.constant dense<0.000000e+00> : vector<8x64xf32>
      %125 = tpu.matmul %123, %124, %cst_73 {dimension_numbers = #tpu.dot_dimension_numbers<[1], [0], [0], [1], [0, 0, 1, 1], [], []>} : vector<8x32xbf16>, vector<32x64xbf16>, vector<8x64xf32> -> vector<8x64xf32>
      %c0_74 = arith.constant 0 : index
      %c0_75 = arith.constant 0 : index
      %126 = vector.load %arg7[%c0_74, %c0_75] : memref<1x64xf32, #tpu.memory_space<vmem>>, vector<1x64xf32>
      %127 = vector.broadcast %126 : vector<1x64xf32> to vector<8x64xf32>
      %128 = arith.addf %125, %127 : vector<8x64xf32>
      %129 = vector.extract_strided_slice %128 {offsets = [0, 0], sizes = [8, 8], strides = [1, 1]} : vector<8x64xf32> to vector<8x8xf32>
      %130 = arith.truncf %129 : vector<8x8xf32> to vector<8x8xbf16>
      %c0_76 = arith.constant 0 : index
      %c0_77 = arith.constant 0 : index
      %c0_78 = arith.constant 0 : index
      %131 = vector.load %arg19[%c0_76, %c0_77, %c0_78] : memref<4x8x8xbf16, #tpu.memory_space<vmem>>, vector<1x8x8xbf16>
      %132 = vector.shape_cast %131 : vector<1x8x8xbf16> to vector<8x8xbf16>
      %133 = vector.shape_cast %130 : vector<8x8xbf16> to vector<1x8x8xbf16>
      tpu.vector_store %arg19[%c0_76, %c0_77, %c0_78], %133 {strides = array<i32>} : memref<4x8x8xbf16, #tpu.memory_space<vmem>>, vector<1x8x8xbf16>,
      %134 = vector.extract_strided_slice %128 {offsets = [0, 32], sizes = [8, 8], strides = [1, 1]} : vector<8x64xf32> to vector<8x8xf32>
      %135 = arith.truncf %134 : vector<8x8xf32> to vector<8x8xbf16>
      %c0_79 = arith.constant 0 : index
      %c0_80 = arith.constant 0 : index
      %c0_81 = arith.constant 0 : index
      %136 = vector.load %arg20[%c0_79, %c0_80, %c0_81] : memref<4x8x8xbf16, #tpu.memory_space<vmem>>, vector<1x8x8xbf16>
      %137 = vector.shape_cast %136 : vector<1x8x8xbf16> to vector<8x8xbf16>
      %138 = vector.shape_cast %135 : vector<8x8xbf16> to vector<1x8x8xbf16>
      tpu.vector_store %arg20[%c0_79, %c0_80, %c0_81], %138 {strides = array<i32>} : memref<4x8x8xbf16, #tpu.memory_space<vmem>>, vector<1x8x8xbf16>,
      %139 = vector.extract_strided_slice %128 {offsets = [0, 8], sizes = [8, 8], strides = [1, 1]} : vector<8x64xf32> to vector<8x8xf32>
      %140 = arith.truncf %139 : vector<8x8xf32> to vector<8x8xbf16>
      %c1_82 = arith.constant 1 : index
      %c0_83 = arith.constant 0 : index
      %c0_84 = arith.constant 0 : index
      %141 = vector.load %arg19[%c1_82, %c0_83, %c0_84] : memref<4x8x8xbf16, #tpu.memory_space<vmem>>, vector<1x8x8xbf16>
      %142 = vector.shape_cast %141 : vector<1x8x8xbf16> to vector<8x8xbf16>
      %143 = vector.shape_cast %140 : vector<8x8xbf16> to vector<1x8x8xbf16>
      tpu.vector_store %arg19[%c1_82, %c0_83, %c0_84], %143 {strides = array<i32>} : memref<4x8x8xbf16, #tpu.memory_space<vmem>>, vector<1x8x8xbf16>,
      %144 = vector.extract_strided_slice %128 {offsets = [0, 40], sizes = [8, 8], strides = [1, 1]} : vector<8x64xf32> to vector<8x8xf32>
      %145 = arith.truncf %144 : vector<8x8xf32> to vector<8x8xbf16>
      %c1_85 = arith.constant 1 : index
      %c0_86 = arith.constant 0 : index
      %c0_87 = arith.constant 0 : index
      %146 = vector.load %arg20[%c1_85, %c0_86, %c0_87] : memref<4x8x8xbf16, #tpu.memory_space<vmem>>, vector<1x8x8xbf16>
      %147 = vector.shape_cast %146 : vector<1x8x8xbf16> to vector<8x8xbf16>
      %148 = vector.shape_cast %145 : vector<8x8xbf16> to vector<1x8x8xbf16>
      tpu.vector_store %arg20[%c1_85, %c0_86, %c0_87], %148 {strides = array<i32>} : memref<4x8x8xbf16, #tpu.memory_space<vmem>>, vector<1x8x8xbf16>,
      %149 = vector.extract_strided_slice %128 {offsets = [0, 16], sizes = [8, 8], strides = [1, 1]} : vector<8x64xf32> to vector<8x8xf32>
      %150 = arith.truncf %149 : vector<8x8xf32> to vector<8x8xbf16>
      %c2_88 = arith.constant 2 : index
      %c0_89 = arith.constant 0 : index
      %c0_90 = arith.constant 0 : index
      %151 = vector.load %arg19[%c2_88, %c0_89, %c0_90] : memref<4x8x8xbf16, #tpu.memory_space<vmem>>, vector<1x8x8xbf16>
      %152 = vector.shape_cast %151 : vector<1x8x8xbf16> to vector<8x8xbf16>
      %153 = vector.shape_cast %150 : vector<8x8xbf16> to vector<1x8x8xbf16>
      tpu.vector_store %arg19[%c2_88, %c0_89, %c0_90], %153 {strides = array<i32>} : memref<4x8x8xbf16, #tpu.memory_space<vmem>>, vector<1x8x8xbf16>,
      %154 = vector.extract_strided_slice %128 {offsets = [0, 48], sizes = [8, 8], strides = [1, 1]} : vector<8x64xf32> to vector<8x8xf32>
      %155 = arith.truncf %154 : vector<8x8xf32> to vector<8x8xbf16>
      %c2_91 = arith.constant 2 : index
      %c0_92 = arith.constant 0 : index
      %c0_93 = arith.constant 0 : index
      %156 = vector.load %arg20[%c2_91, %c0_92, %c0_93] : memref<4x8x8xbf16, #tpu.memory_space<vmem>>, vector<1x8x8xbf16>
      %157 = vector.shape_cast %156 : vector<1x8x8xbf16> to vector<8x8xbf16>
      %158 = vector.shape_cast %155 : vector<8x8xbf16> to vector<1x8x8xbf16>
      tpu.vector_store %arg20[%c2_91, %c0_92, %c0_93], %158 {strides = array<i32>} : memref<4x8x8xbf16, #tpu.memory_space<vmem>>, vector<1x8x8xbf16>,
      %159 = vector.extract_strided_slice %128 {offsets = [0, 24], sizes = [8, 8], strides = [1, 1]} : vector<8x64xf32> to vector<8x8xf32>
      %160 = arith.truncf %159 : vector<8x8xf32> to vector<8x8xbf16>
      %c3_94 = arith.constant 3 : index
      %c0_95 = arith.constant 0 : index
      %c0_96 = arith.constant 0 : index
      %161 = vector.load %arg19[%c3_94, %c0_95, %c0_96] : memref<4x8x8xbf16, #tpu.memory_space<vmem>>, vector<1x8x8xbf16>
      %162 = vector.shape_cast %161 : vector<1x8x8xbf16> to vector<8x8xbf16>
      %163 = vector.shape_cast %160 : vector<8x8xbf16> to vector<1x8x8xbf16>
      tpu.vector_store %arg19[%c3_94, %c0_95, %c0_96], %163 {strides = array<i32>} : memref<4x8x8xbf16, #tpu.memory_space<vmem>>, vector<1x8x8xbf16>,
      %164 = vector.extract_strided_slice %128 {offsets = [0, 56], sizes = [8, 8], strides = [1, 1]} : vector<8x64xf32> to vector<8x8xf32>
      %165 = arith.truncf %164 : vector<8x8xf32> to vector<8x8xbf16>
      %c3_97 = arith.constant 3 : index
      %c0_98 = arith.constant 0 : index
      %c0_99 = arith.constant 0 : index
      %166 = vector.load %arg20[%c3_97, %c0_98, %c0_99] : memref<4x8x8xbf16, #tpu.memory_space<vmem>>, vector<1x8x8xbf16>
      %167 = vector.shape_cast %166 : vector<1x8x8xbf16> to vector<8x8xbf16>
      %168 = vector.shape_cast %165 : vector<8x8xbf16> to vector<1x8x8xbf16>
      tpu.vector_store %arg20[%c3_97, %c0_98, %c0_99], %168 {strides = array<i32>} : memref<4x8x8xbf16, #tpu.memory_space<vmem>>, vector<1x8x8xbf16>,
    } else {
    }
    %c0 = arith.constant 0 : index
    %c0_1 = arith.constant 0 : index
    %c0_2 = arith.constant 0 : index
    %3 = vector.load %arg2[%c0, %c0_1, %c0_2] : memref<1x8x32xf32, #tpu.memory_space<vmem>>, vector<1x8x32xf32>
    %4 = vector.shape_cast %3 : vector<1x8x32xf32> to vector<8x32xf32>
    %5 = arith.truncf %4 : vector<8x32xf32> to vector<8x32xbf16>
    %c0_3 = arith.constant 0 : index
    %c0_4 = arith.constant 0 : index
    %6 = vector.load %arg4[%c0_3, %c0_4] : memref<32x32xbf16, #tpu.memory_space<vmem>>, vector<32x32xbf16>
    %cst = arith.constant dense<0.000000e+00> : vector<8x32xf32>
    %7 = tpu.matmul %5, %6, %cst {dimension_numbers = #tpu.dot_dimension_numbers<[1], [0], [0], [1], [0, 0, 1, 1], [], []>} : vector<8x32xbf16>, vector<32x32xbf16>, vector<8x32xf32> -> vector<8x32xf32>
    %c0_5 = arith.constant 0 : index
    %c0_6 = arith.constant 0 : index
    %8 = vector.load %arg5[%c0_5, %c0_6] : memref<1x32xf32, #tpu.memory_space<vmem>>, vector<1x32xf32>
    %9 = vector.broadcast %8 : vector<1x32xf32> to vector<8x32xf32>
    %10 = arith.addf %7, %9 : vector<8x32xf32>
    %11 = vector.extract_strided_slice %10 {offsets = [0, 0], sizes = [8, 8], strides = [1, 1]} : vector<8x32xf32> to vector<8x8xf32>
    %12 = arith.truncf %11 : vector<8x8xf32> to vector<8x8xbf16>
    %c0_7 = arith.constant 0 : index
    %c0_8 = arith.constant 0 : index
    %c0_9 = arith.constant 0 : index
    %13 = vector.load %arg21[%c0_7, %c0_8, %c0_9] : memref<4x8x8xbf16, #tpu.memory_space<vmem>>, vector<1x8x8xbf16>
    %14 = vector.shape_cast %13 : vector<1x8x8xbf16> to vector<8x8xbf16>
    %15 = vector.shape_cast %12 : vector<8x8xbf16> to vector<1x8x8xbf16>
    tpu.vector_store %arg21[%c0_7, %c0_8, %c0_9], %15 {strides = array<i32>} : memref<4x8x8xbf16, #tpu.memory_space<vmem>>, vector<1x8x8xbf16>,
    %16 = vector.extract_strided_slice %10 {offsets = [0, 8], sizes = [8, 8], strides = [1, 1]} : vector<8x32xf32> to vector<8x8xf32>
    %17 = arith.truncf %16 : vector<8x8xf32> to vector<8x8xbf16>
    %c1 = arith.constant 1 : index
    %c0_10 = arith.constant 0 : index
    %c0_11 = arith.constant 0 : index
    %18 = vector.load %arg21[%c1, %c0_10, %c0_11] : memref<4x8x8xbf16, #tpu.memory_space<vmem>>, vector<1x8x8xbf16>
    %19 = vector.shape_cast %18 : vector<1x8x8xbf16> to vector<8x8xbf16>
    %20 = vector.shape_cast %17 : vector<8x8xbf16> to vector<1x8x8xbf16>
    tpu.vector_store %arg21[%c1, %c0_10, %c0_11], %20 {strides = array<i32>} : memref<4x8x8xbf16, #tpu.memory_space<vmem>>, vector<1x8x8xbf16>,
    %21 = vector.extract_strided_slice %10 {offsets = [0, 16], sizes = [8, 8], strides = [1, 1]} : vector<8x32xf32> to vector<8x8xf32>
    %22 = arith.truncf %21 : vector<8x8xf32> to vector<8x8xbf16>
    %c2 = arith.constant 2 : index
    %c0_12 = arith.constant 0 : index
    %c0_13 = arith.constant 0 : index
    %23 = vector.load %arg21[%c2, %c0_12, %c0_13] : memref<4x8x8xbf16, #tpu.memory_space<vmem>>, vector<1x8x8xbf16>
    %24 = vector.shape_cast %23 : vector<1x8x8xbf16> to vector<8x8xbf16>
    %25 = vector.shape_cast %22 : vector<8x8xbf16> to vector<1x8x8xbf16>
    tpu.vector_store %arg21[%c2, %c0_12, %c0_13], %25 {strides = array<i32>} : memref<4x8x8xbf16, #tpu.memory_space<vmem>>, vector<1x8x8xbf16>,
    %26 = vector.extract_strided_slice %10 {offsets = [0, 24], sizes = [8, 8], strides = [1, 1]} : vector<8x32xf32> to vector<8x8xf32>
    %27 = arith.truncf %26 : vector<8x8xf32> to vector<8x8xbf16>
    %c3 = arith.constant 3 : index
    %c0_14 = arith.constant 0 : index
    %c0_15 = arith.constant 0 : index
    %28 = vector.load %arg21[%c3, %c0_14, %c0_15] : memref<4x8x8xbf16, #tpu.memory_space<vmem>>, vector<1x8x8xbf16>
    %29 = vector.shape_cast %28 : vector<1x8x8xbf16> to vector<8x8xbf16>
    %30 = vector.shape_cast %27 : vector<8x8xbf16> to vector<1x8x8xbf16>
    tpu.vector_store %arg21[%c3, %c0_14, %c0_15], %30 {strides = array<i32>} : memref<4x8x8xbf16, #tpu.memory_space<vmem>>, vector<1x8x8xbf16>,
    %c0_16 = arith.constant 0 : index
    %c0_17 = arith.constant 0 : index
    %c0_18 = arith.constant 0 : index
    %31 = vector.load %arg21[%c0_16, %c0_17, %c0_18] : memref<4x8x8xbf16, #tpu.memory_space<vmem>>, vector<4x8x8xbf16>
    %c0_19 = arith.constant 0 : index
    %c0_20 = arith.constant 0 : index
    %c0_21 = arith.constant 0 : index
    %32 = vector.load %arg19[%c0_19, %c0_20, %c0_21] : memref<4x8x8xbf16, #tpu.memory_space<vmem>>, vector<4x8x8xbf16>
    %c0_22 = arith.constant 0 : index
    %c0_23 = arith.constant 0 : index
    %c0_24 = arith.constant 0 : index
    %33 = vector.load %arg20[%c0_22, %c0_23, %c0_24] : memref<4x8x8xbf16, #tpu.memory_space<vmem>>, vector<4x8x8xbf16>
    "tpu.trace_start"() <{level = 10 : i32, message = "hqd,hkd->hqk"}> : () -> ()
    %cst_25 = arith.constant dense<0.000000e+00> : vector<4x8x8xf32>
    %34 = tpu.matmul %31, %32, %cst_25 {dimension_numbers = #tpu.dot_dimension_numbers<[2], [2], [1], [1], [0, 0, 0, 1, 1, 1], [0], [0]>} : vector<4x8x8xbf16>, vector<4x8x8xbf16>, vector<4x8x8xf32> -> vector<4x8x8xf32>
    "tpu.trace_stop"() : () -> ()
    %cst_26 = arith.constant dense<0xFF800000> : vector<4x8xf32>
    %35 = vector.multi_reduction <maximumf>, %34, %cst_26 [2] : vector<4x8x8xf32> to vector<4x8xf32>
    %36 = vector.shape_cast %35 : vector<4x8xf32> to vector<4x8x1xf32>
    %37 = vector.broadcast %36 : vector<4x8x1xf32> to vector<4x8x8xf32>
    %38 = arith.subf %34, %37 : vector<4x8x8xf32>
    %39 = math.exp %38 : vector<4x8x8xf32>
    %cst_27 = arith.constant dense<0.000000e+00> : vector<4x8xf32>
    %40 = vector.multi_reduction <add>, %39, %cst_27 [2] : vector<4x8x8xf32> to vector<4x8xf32>
    %41 = vector.shape_cast %40 : vector<4x8xf32> to vector<4x8x1xf32>
    %42 = tpu.reciprocal %41 {approx = true} : vector<4x8x1xf32> -> vector<4x8x1xf32>
    %43 = vector.broadcast %42 : vector<4x8x1xf32> to vector<4x8x8xf32>
    %44 = arith.mulf %39, %43 : vector<4x8x8xf32>
    %45 = arith.truncf %44 : vector<4x8x8xf32> to vector<4x8x8xbf16>
    "tpu.trace_start"() <{level = 10 : i32, message = "hqk,hkd->hqd"}> : () -> ()
    %cst_28 = arith.constant dense<0.000000e+00> : vector<4x8x8xf32>
    %46 = tpu.matmul %45, %33, %cst_28 {dimension_numbers = #tpu.dot_dimension_numbers<[2], [1], [1], [2], [0, 0, 0, 1, 1, 2], [0], [0]>} : vector<4x8x8xbf16>, vector<4x8x8xbf16>, vector<4x8x8xf32> -> vector<4x8x8xf32>
    "tpu.trace_stop"() : () -> ()
    %47 = arith.truncf %46 : vector<4x8x8xf32> to vector<4x8x8xbf16>
    %c0_29 = arith.constant 0 : index
    %c0_30 = arith.constant 0 : index
    %c0_31 = arith.constant 0 : index
    %48 = vector.load %arg8[%c0_29, %c0_30, %c0_31] : memref<4x8x32xbf16, #tpu.memory_space<vmem>>, vector<4x8x32xbf16>
    "tpu.trace_start"() <{level = 10 : i32, message = "hqd,hdo->hqo"}> : () -> ()
    %cst_32 = arith.constant dense<0.000000e+00> : vector<4x8x32xf32>
    %49 = tpu.matmul %47, %48, %cst_32 {dimension_numbers = #tpu.dot_dimension_numbers<[2], [1], [1], [2], [0, 0, 0, 1, 1, 2], [0], [0]>} : vector<4x8x8xbf16>, vector<4x8x32xbf16>, vector<4x8x32xf32> -> vector<4x8x32xf32>
    "tpu.trace_stop"() : () -> ()
    %cst_33 = arith.constant dense<0.000000e+00> : vector<8x32xf32>
    %50 = vector.multi_reduction <add>, %49, %cst_33 [0] : vector<4x8x32xf32> to vector<8x32xf32>
    %c0_34 = arith.constant 0 : index
    %c0_35 = arith.constant 0 : index
    %51 = vector.load %arg9[%c0_34, %c0_35] : memref<1x32xf32, #tpu.memory_space<vmem>>, vector<1x32xf32>
    %52 = vector.broadcast %51 : vector<1x32xf32> to vector<8x32xf32>
    %53 = arith.addf %50, %52 : vector<8x32xf32>
    %54 = arith.addf %4, %53 : vector<8x32xf32>
    %c0_36 = arith.constant 0 : index
    %c0_37 = arith.constant 0 : index
    %55 = vector.load %arg14[%c0_36, %c0_37] : memref<1x32xf32, #tpu.memory_space<vmem>>, vector<1x32xf32>
    %c0_38 = arith.constant 0 : index
    %c0_39 = arith.constant 0 : index
    %56 = vector.load %arg15[%c0_38, %c0_39] : memref<1x32xf32, #tpu.memory_space<vmem>>, vector<1x32xf32>
    %cst_40 = arith.constant dense<0.000000e+00> : vector<8xf32>
    %57 = vector.multi_reduction <add>, %54, %cst_40 [1] : vector<8x32xf32> to vector<8xf32>
    %58 = vector.shape_cast %57 : vector<8xf32> to vector<8x1xf32>
    %cst_41 = arith.constant 3.200000e+01 : f32
    %59 = vector.broadcast %cst_41 : f32 to vector<8x1xf32>
    %60 = arith.divf %58, %59 : vector<8x1xf32>
    %61 = vector.broadcast %60 : vector<8x1xf32> to vector<8x32xf32>
    %62 = arith.subf %54, %61 : vector<8x32xf32>
    %63 = arith.mulf %62, %62 : vector<8x32xf32>
    %cst_42 = arith.constant dense<0.000000e+00> : vector<8xf32>
    %64 = vector.multi_reduction <add>, %63, %cst_42 [1] : vector<8x32xf32> to vector<8xf32>
    %65 = vector.shape_cast %64 : vector<8xf32> to vector<8x1xf32>
    %cst_43 = arith.constant 3.200000e+01 : f32
    %66 = vector.broadcast %cst_43 : f32 to vector<8x1xf32>
    %67 = arith.divf %65, %66 : vector<8x1xf32>
    %68 = vector.broadcast %60 : vector<8x1xf32> to vector<8x32xf32>
    %69 = arith.subf %54, %68 : vector<8x32xf32>
    %cst_44 = arith.constant 9.99999974E-6 : f32
    %70 = vector.broadcast %cst_44 : f32 to vector<8x1xf32>
    %71 = arith.addf %67, %70 : vector<8x1xf32>
    %72 = math.rsqrt %71 : vector<8x1xf32>
    %73 = vector.broadcast %72 : vector<8x1xf32> to vector<8x32xf32>
    %74 = arith.mulf %69, %73 : vector<8x32xf32>
    %75 = vector.broadcast %55 : vector<1x32xf32> to vector<8x32xf32>
    %76 = arith.mulf %74, %75 : vector<8x32xf32>
    %77 = vector.broadcast %56 : vector<1x32xf32> to vector<8x32xf32>
    %78 = arith.addf %76, %77 : vector<8x32xf32>
    %79 = arith.truncf %78 : vector<8x32xf32> to vector<8x32xbf16>
    %c0_45 = arith.constant 0 : index
    %c0_46 = arith.constant 0 : index
    %80 = vector.load %arg10[%c0_45, %c0_46] : memref<32x64xbf16, #tpu.memory_space<vmem>>, vector<32x64xbf16>
    %cst_47 = arith.constant dense<0.000000e+00> : vector<8x64xf32>
    %81 = tpu.matmul %79, %80, %cst_47 {dimension_numbers = #tpu.dot_dimension_numbers<[1], [0], [0], [1], [0, 0, 1, 1], [], []>} : vector<8x32xbf16>, vector<32x64xbf16>, vector<8x64xf32> -> vector<8x64xf32>
    %c0_48 = arith.constant 0 : index
    %c0_49 = arith.constant 0 : index
    %82 = vector.load %arg11[%c0_48, %c0_49] : memref<1x64xf32, #tpu.memory_space<vmem>>, vector<1x64xf32>
    %83 = vector.broadcast %82 : vector<1x64xf32> to vector<8x64xf32>
    %84 = arith.addf %81, %83 : vector<8x64xf32>
    %cst_50 = arith.constant 0.000000e+00 : f32
    %85 = vector.broadcast %cst_50 : f32 to vector<8x64xf32>
    %86 = arith.maximumf %84, %85 : vector<8x64xf32>
    %87 = arith.truncf %86 : vector<8x64xf32> to vector<8x64xbf16>
    %c0_51 = arith.constant 0 : index
    %c0_52 = arith.constant 0 : index
    %88 = vector.load %arg12[%c0_51, %c0_52] : memref<64x32xbf16, #tpu.memory_space<vmem>>, vector<64x32xbf16>
    %cst_53 = arith.constant dense<0.000000e+00> : vector<8x32xf32>
    %89 = tpu.matmul %87, %88, %cst_53 {dimension_numbers = #tpu.dot_dimension_numbers<[1], [0], [0], [1], [0, 0, 1, 1], [], []>} : vector<8x64xbf16>, vector<64x32xbf16>, vector<8x32xf32> -> vector<8x32xf32>
    %c0_54 = arith.constant 0 : index
    %c0_55 = arith.constant 0 : index
    %90 = vector.load %arg13[%c0_54, %c0_55] : memref<1x32xf32, #tpu.memory_space<vmem>>, vector<1x32xf32>
    %91 = vector.broadcast %90 : vector<1x32xf32> to vector<8x32xf32>
    %92 = arith.addf %89, %91 : vector<8x32xf32>
    %93 = arith.addf %78, %92 : vector<8x32xf32>
    %c0_56 = arith.constant 0 : index
    %c0_57 = arith.constant 0 : index
    %94 = vector.load %arg16[%c0_56, %c0_57] : memref<1x32xf32, #tpu.memory_space<vmem>>, vector<1x32xf32>
    %c0_58 = arith.constant 0 : index
    %c0_59 = arith.constant 0 : index
    %95 = vector.load %arg17[%c0_58, %c0_59] : memref<1x32xf32, #tpu.memory_space<vmem>>, vector<1x32xf32>
    %cst_60 = arith.constant dense<0.000000e+00> : vector<8xf32>
    %96 = vector.multi_reduction <add>, %93, %cst_60 [1] : vector<8x32xf32> to vector<8xf32>
    %97 = vector.shape_cast %96 : vector<8xf32> to vector<8x1xf32>
    %cst_61 = arith.constant 3.200000e+01 : f32
    %98 = vector.broadcast %cst_61 : f32 to vector<8x1xf32>
    %99 = arith.divf %97, %98 : vector<8x1xf32>
    %100 = vector.broadcast %99 : vector<8x1xf32> to vector<8x32xf32>
    %101 = arith.subf %93, %100 : vector<8x32xf32>
    %102 = arith.mulf %101, %101 : vector<8x32xf32>
    %cst_62 = arith.constant dense<0.000000e+00> : vector<8xf32>
    %103 = vector.multi_reduction <add>, %102, %cst_62 [1] : vector<8x32xf32> to vector<8xf32>
    %104 = vector.shape_cast %103 : vector<8xf32> to vector<8x1xf32>
    %cst_63 = arith.constant 3.200000e+01 : f32
    %105 = vector.broadcast %cst_63 : f32 to vector<8x1xf32>
    %106 = arith.divf %104, %105 : vector<8x1xf32>
    %107 = vector.broadcast %99 : vector<8x1xf32> to vector<8x32xf32>
    %108 = arith.subf %93, %107 : vector<8x32xf32>
    %cst_64 = arith.constant 9.99999974E-6 : f32
    %109 = vector.broadcast %cst_64 : f32 to vector<8x1xf32>
    %110 = arith.addf %106, %109 : vector<8x1xf32>
    %111 = math.rsqrt %110 : vector<8x1xf32>
    %112 = vector.broadcast %111 : vector<8x1xf32> to vector<8x32xf32>
    %113 = arith.mulf %108, %112 : vector<8x32xf32>
    %114 = vector.broadcast %94 : vector<1x32xf32> to vector<8x32xf32>
    %115 = arith.mulf %113, %114 : vector<8x32xf32>
    %116 = vector.broadcast %95 : vector<1x32xf32> to vector<8x32xf32>
    %117 = arith.addf %115, %116 : vector<8x32xf32>
    %c0_65 = arith.constant 0 : index
    %c0_66 = arith.constant 0 : index
    %c0_67 = arith.constant 0 : index
    %118 = vector.load %arg18[%c0_65, %c0_66, %c0_67] : memref<1x8x32xf32, #tpu.memory_space<vmem>>, vector<1x8x32xf32>
    %119 = vector.shape_cast %118 : vector<1x8x32xf32> to vector<8x32xf32>
    %120 = vector.shape_cast %117 : vector<8x32xf32> to vector<1x8x32xf32>
    tpu.vector_store %arg18[%c0_65, %c0_66, %c0_67], %120 {strides = array<i32>} : memref<1x8x32xf32, #tpu.memory_space<vmem>>, vector<1x8x32xf32>,
    return
  }
  func.func @transform_0(%arg0: i32, %arg1: i32) -> (i32, i32, i32) {
    %c0_i32 = arith.constant 0 : i32
    %c0_i32_0 = arith.constant 0 : i32
    return %arg0, %arg1, %c0_i32 : i32, i32, i32
  }
  func.func @transform_1(%arg0: i32, %arg1: i32) -> (i32, i32, i32) {
    %c0_i32 = arith.constant 0 : i32
    %c0_i32_0 = arith.constant 0 : i32
    %c0_i32_1 = arith.constant 0 : i32
    return %arg0, %c0_i32, %c0_i32_0 : i32, i32, i32
  }
  func.func @transform_2(%arg0: i32, %arg1: i32) -> (i32, i32) {
    %c0_i32 = arith.constant 0 : i32
    %c0_i32_0 = arith.constant 0 : i32
    %c0_i32_1 = arith.constant 0 : i32
    return %c0_i32, %c0_i32_0 : i32, i32
  }
  func.func @transform_3(%arg0: i32, %arg1: i32) -> (i32, i32) {
    %c0_i32 = arith.constant 0 : i32
    %c0_i32_0 = arith.constant 0 : i32
    %c0_i32_1 = arith.constant 0 : i32
    return %c0_i32, %c0_i32_0 : i32, i32
  }
  func.func @transform_4(%arg0: i32, %arg1: i32) -> (i32, i32) {
    %c0_i32 = arith.constant 0 : i32
    %c0_i32_0 = arith.constant 0 : i32
    %c0_i32_1 = arith.constant 0 : i32
    return %c0_i32, %c0_i32_0 : i32, i32
  }
  func.func @transform_5(%arg0: i32, %arg1: i32) -> (i32, i32) {
    %c0_i32 = arith.constant 0 : i32
    %c0_i32_0 = arith.constant 0 : i32
    %c0_i32_1 = arith.constant 0 : i32
    return %c0_i32, %c0_i32_0 : i32, i32
  }
  func.func @transform_6(%arg0: i32, %arg1: i32) -> (i32, i32, i32) {
    %c0_i32 = arith.constant 0 : i32
    %c0_i32_0 = arith.constant 0 : i32
    %c0_i32_1 = arith.constant 0 : i32
    %c0_i32_2 = arith.constant 0 : i32
    return %c0_i32, %c0_i32_0, %c0_i32_1 : i32, i32, i32
  }
  func.func @transform_7(%arg0: i32, %arg1: i32) -> (i32, i32) {
    %c0_i32 = arith.constant 0 : i32
    %c0_i32_0 = arith.constant 0 : i32
    %c0_i32_1 = arith.constant 0 : i32
    return %c0_i32, %c0_i32_0 : i32, i32
  }
  func.func @transform_8(%arg0: i32, %arg1: i32) -> (i32, i32) {
    %c0_i32 = arith.constant 0 : i32
    %c0_i32_0 = arith.constant 0 : i32
    %c0_i32_1 = arith.constant 0 : i32
    return %c0_i32, %c0_i32_0 : i32, i32
  }
  func.func @transform_9(%arg0: i32, %arg1: i32) -> (i32, i32) {
    %c0_i32 = arith.constant 0 : i32
    %c0_i32_0 = arith.constant 0 : i32
    %c0_i32_1 = arith.constant 0 : i32
    return %c0_i32, %c0_i32_0 : i32, i32
  }
  func.func @transform_10(%arg0: i32, %arg1: i32) -> (i32, i32) {
    %c0_i32 = arith.constant 0 : i32
    %c0_i32_0 = arith.constant 0 : i32
    %c0_i32_1 = arith.constant 0 : i32
    return %c0_i32, %c0_i32_0 : i32, i32
  }
  func.func @transform_11(%arg0: i32, %arg1: i32) -> (i32, i32) {
    %c0_i32 = arith.constant 0 : i32
    %c0_i32_0 = arith.constant 0 : i32
    %c0_i32_1 = arith.constant 0 : i32
    return %c0_i32, %c0_i32_0 : i32, i32
  }
  func.func @transform_12(%arg0: i32, %arg1: i32) -> (i32, i32) {
    %c0_i32 = arith.constant 0 : i32
    %c0_i32_0 = arith.constant 0 : i32
    %c0_i32_1 = arith.constant 0 : i32
    return %c0_i32, %c0_i32_0 : i32, i32
  }
  func.func @transform_13(%arg0: i32, %arg1: i32) -> (i32, i32) {
    %c0_i32 = arith.constant 0 : i32
    %c0_i32_0 = arith.constant 0 : i32
    %c0_i32_1 = arith.constant 0 : i32
    return %c0_i32, %c0_i32_0 : i32, i32
  }
  func.func @transform_14(%arg0: i32, %arg1: i32) -> (i32, i32) {
    %c0_i32 = arith.constant 0 : i32
    %c0_i32_0 = arith.constant 0 : i32
    %c0_i32_1 = arith.constant 0 : i32
    return %c0_i32, %c0_i32_0 : i32, i32
  }
  func.func @transform_15(%arg0: i32, %arg1: i32) -> (i32, i32) {
    %c0_i32 = arith.constant 0 : i32
    %c0_i32_0 = arith.constant 0 : i32
    %c0_i32_1 = arith.constant 0 : i32
    return %c0_i32, %c0_i32_0 : i32, i32
  }
  func.func @transform_16(%arg0: i32, %arg1: i32) -> (i32, i32, i32) {
    %c0_i32 = arith.constant 0 : i32
    %c0_i32_0 = arith.constant 0 : i32
    return %arg0, %arg1, %c0_i32 : i32, i32, i32
  }
}

module attributes {stable_mosaic.version = 11 : i64} {
  func.func @_encoder_layer_kernel(%arg0: i32, %arg1: i32, %arg2: memref<1x8x32xf32, #tpu.memory_space<vmem>>, %arg3: memref<1x8x32xf32, #tpu.memory_space<vmem>>, %arg4: memref<32x32xbf16, #tpu.memory_space<vmem>>, %arg5: memref<1x32xf32, #tpu.memory_space<vmem>>, %arg6: memref<32x64xbf16, #tpu.memory_space<vmem>>, %arg7: memref<1x64xf32, #tpu.memory_space<vmem>>, %arg8: memref<4x8x32xbf16, #tpu.memory_space<vmem>>, %arg9: memref<1x32xf32, #tpu.memory_space<vmem>>, %arg10: memref<32x64xbf16, #tpu.memory_space<vmem>>, %arg11: memref<1x64xf32, #tpu.memory_space<vmem>>, %arg12: memref<64x32xbf16, #tpu.memory_space<vmem>>, %arg13: memref<1x32xf32, #tpu.memory_space<vmem>>, %arg14: memref<1x32xf32, #tpu.memory_space<vmem>>, %arg15: memref<1x32xf32, #tpu.memory_space<vmem>>, %arg16: memref<1x32xf32, #tpu.memory_space<vmem>>, %arg17: memref<1x32xf32, #tpu.memory_space<vmem>>, %arg18: memref<1x8x32xf32, #tpu.memory_space<vmem>>, %arg19: memref<4x8x8xbf16, #tpu.memory_space<vmem>>, %arg20: memref<4x8x8xbf16, #tpu.memory_space<vmem>>, %arg21: memref<4x8x8xbf16, #tpu.memory_space<vmem>>) attributes {dimension_semantics = [#tpu.dimension_semantics<parallel>, #tpu.dimension_semantics<arbitrary>], iteration_bounds = array<i64: 2, 1>, scalar_prefetch = 0 : i64, scratch_operands = 3 : i64, tpu.core_type = #tpu.core_type<tc>, window_params = [{transform_indices = @transform_0, window_bounds = array<i64: 1, 8, 32>}, {transform_indices = @transform_1, window_bounds = array<i64: 1, 8, 32>}, {pipeline_mode = #tpu.pipeline_mode<synchronous>, transform_indices = @transform_2, window_bounds = array<i64: 32, 32>}, {pipeline_mode = #tpu.pipeline_mode<synchronous>, transform_indices = @transform_3, window_bounds = array<i64: 1, 32>}, {pipeline_mode = #tpu.pipeline_mode<synchronous>, transform_indices = @transform_4, window_bounds = array<i64: 32, 64>}, {pipeline_mode = #tpu.pipeline_mode<synchronous>, transform_indices = @transform_5, window_bounds = array<i64: 1, 64>}, {pipeline_mode = #tpu.pipeline_mode<synchronous>, transform_indices = @transform_6, window_bounds = array<i64: 4, 8, 32>}, {pipeline_mode = #tpu.pipeline_mode<synchronous>, transform_indices = @transform_7, window_bounds = array<i64: 1, 32>}, {pipeline_mode = #tpu.pipeline_mode<synchronous>, transform_indices = @transform_8, window_bounds = array<i64: 32, 64>}, {pipeline_mode = #tpu.pipeline_mode<synchronous>, transform_indices = @transform_9, window_bounds = array<i64: 1, 64>}, {pipeline_mode = #tpu.pipeline_mode<synchronous>, transform_indices = @transform_10, window_bounds = array<i64: 64, 32>}, {pipeline_mode = #tpu.pipeline_mode<synchronous>, transform_indices = @transform_11, window_bounds = array<i64: 1, 32>}, {pipeline_mode = #tpu.pipeline_mode<synchronous>, transform_indices = @transform_12, window_bounds = array<i64: 1, 32>}, {pipeline_mode = #tpu.pipeline_mode<synchronous>, transform_indices = @transform_13, window_bounds = array<i64: 1, 32>}, {pipeline_mode = #tpu.pipeline_mode<synchronous>, transform_indices = @transform_14, window_bounds = array<i64: 1, 32>}, {pipeline_mode = #tpu.pipeline_mode<synchronous>, transform_indices = @transform_15, window_bounds = array<i64: 1, 32>}, {transform_indices = @transform_16, window_bounds = array<i64: 1, 8, 32>}]} {
    %c0_i32 = arith.constant 0 : i32
    %0 = arith.cmpi eq, %arg1, %c0_i32 : i32
    %1 = arith.extui %0 : i1 to i32
    %c0_i32_0 = arith.constant 0 : i32
    %2 = arith.cmpi ne, %1, %c0_i32_0 : i32
    scf.if %2 {
      %c0_68 = arith.constant 0 : index
      %c0_69 = arith.constant 0 : index
      %c0_70 = arith.constant 0 : index
      %121 = vector.load %arg3[%c0_68, %c0_69, %c0_70] : memref<1x8x32xf32, #tpu.memory_space<vmem>>, vector<1x8x32xf32>
      %122 = vector.shape_cast %121 : vector<1x8x32xf32> to vector<8x32xf32>
      %123 = arith.truncf %122 : vector<8x32xf32> to vector<8x32xbf16>
      %c0_71 = arith.constant 0 : index
      %c0_72 = arith.constant 0 : index
      %124 = vector.load %arg6[%c0_71, %c0_72] : memref<32x64xbf16, #tpu.memory_space<vmem>>, vector<32x64xbf16>
      %cst_73 = arith.constant dense<0.000000e+00> : vector<8x64xf32>
      %125 = tpu.matmul %123, %124, %cst_73 {dimension_numbers = #tpu.dot_dimension_numbers<[1], [0], [0], [1], [0, 0, 1, 1], [], []>} : vector<8x32xbf16>, vector<32x64xbf16>, vector<8x64xf32> -> vector<8x64xf32>
      %c0_74 = arith.constant 0 : index
      %c0_75 = arith.constant 0 : index
      %126 = vector.load %arg7[%c0_74, %c0_75] : memref<1x64xf32, #tpu.memory_space<vmem>>, vector<1x64xf32>
      %127 = vector.broadcast %126 : vector<1x64xf32> to vector<8x64xf32>
      %128 = arith.addf %125, %127 : vector<8x64xf32>
      %129 = vector.extract_strided_slice %128 {offsets = [0, 0], sizes = [8, 8], strides = [1, 1]} : vector<8x64xf32> to vector<8x8xf32>
      %130 = arith.truncf %129 : vector<8x8xf32> to vector<8x8xbf16>
      %c0_76 = arith.constant 0 : index
      %c0_77 = arith.constant 0 : index
      %c0_78 = arith.constant 0 : index
      %131 = vector.load %arg19[%c0_76, %c0_77, %c0_78] : memref<4x8x8xbf16, #tpu.memory_space<vmem>>, vector<1x8x8xbf16>
      %132 = vector.shape_cast %131 : vector<1x8x8xbf16> to vector<8x8xbf16>
      %133 = vector.shape_cast %130 : vector<8x8xbf16> to vector<1x8x8xbf16>
      tpu.vector_store %arg19[%c0_76, %c0_77, %c0_78], %133 {strides = array<i32>} : memref<4x8x8xbf16, #tpu.memory_space<vmem>>, vector<1x8x8xbf16>,
      %134 = vector.extract_strided_slice %128 {offsets = [0, 32], sizes = [8, 8], strides = [1, 1]} : vector<8x64xf32> to vector<8x8xf32>
      %135 = arith.truncf %134 : vector<8x8xf32> to vector<8x8xbf16>
      %c0_79 = arith.constant 0 : index
      %c0_80 = arith.constant 0 : index
      %c0_81 = arith.constant 0 : index
      %136 = vector.load %arg20[%c0_79, %c0_80, %c0_81] : memref<4x8x8xbf16, #tpu.memory_space<vmem>>, vector<1x8x8xbf16>
      %137 = vector.shape_cast %136 : vector<1x8x8xbf16> to vector<8x8xbf16>
      %138 = vector.shape_cast %135 : vector<8x8xbf16> to vector<1x8x8xbf16>
      tpu.vector_store %arg20[%c0_79, %c0_80, %c0_81], %138 {strides = array<i32>} : memref<4x8x8xbf16, #tpu.memory_space<vmem>>, vector<1x8x8xbf16>,
      %139 = vector.extract_strided_slice %128 {offsets = [0, 8], sizes = [8, 8], strides = [1, 1]} : vector<8x64xf32> to vector<8x8xf32>
      %140 = arith.truncf %139 : vector<8x8xf32> to vector<8x8xbf16>
      %c1_82 = arith.constant 1 : index
      %c0_83 = arith.constant 0 : index
      %c0_84 = arith.constant 0 : index
      %141 = vector.load %arg19[%c1_82, %c0_83, %c0_84] : memref<4x8x8xbf16, #tpu.memory_space<vmem>>, vector<1x8x8xbf16>
      %142 = vector.shape_cast %141 : vector<1x8x8xbf16> to vector<8x8xbf16>
      %143 = vector.shape_cast %140 : vector<8x8xbf16> to vector<1x8x8xbf16>
      tpu.vector_store %arg19[%c1_82, %c0_83, %c0_84], %143 {strides = array<i32>} : memref<4x8x8xbf16, #tpu.memory_space<vmem>>, vector<1x8x8xbf16>,
      %144 = vector.extract_strided_slice %128 {offsets = [0, 40], sizes = [8, 8], strides = [1, 1]} : vector<8x64xf32> to vector<8x8xf32>
      %145 = arith.truncf %144 : vector<8x8xf32> to vector<8x8xbf16>
      %c1_85 = arith.constant 1 : index
      %c0_86 = arith.constant 0 : index
      %c0_87 = arith.constant 0 : index
      %146 = vector.load %arg20[%c1_85, %c0_86, %c0_87] : memref<4x8x8xbf16, #tpu.memory_space<vmem>>, vector<1x8x8xbf16>
      %147 = vector.shape_cast %146 : vector<1x8x8xbf16> to vector<8x8xbf16>
      %148 = vector.shape_cast %145 : vector<8x8xbf16> to vector<1x8x8xbf16>
      tpu.vector_store %arg20[%c1_85, %c0_86, %c0_87], %148 {strides = array<i32>} : memref<4x8x8xbf16, #tpu.memory_space<vmem>>, vector<1x8x8xbf16>,
      %149 = vector.extract_strided_slice %128 {offsets = [0, 16], sizes = [8, 8], strides = [1, 1]} : vector<8x64xf32> to vector<8x8xf32>
      %150 = arith.truncf %149 : vector<8x8xf32> to vector<8x8xbf16>
      %c2_88 = arith.constant 2 : index
      %c0_89 = arith.constant 0 : index
      %c0_90 = arith.constant 0 : index
      %151 = vector.load %arg19[%c2_88, %c0_89, %c0_90] : memref<4x8x8xbf16, #tpu.memory_space<vmem>>, vector<1x8x8xbf16>
      %152 = vector.shape_cast %151 : vector<1x8x8xbf16> to vector<8x8xbf16>
      %153 = vector.shape_cast %150 : vector<8x8xbf16> to vector<1x8x8xbf16>
      tpu.vector_store %arg19[%c2_88, %c0_89, %c0_90], %153 {strides = array<i32>} : memref<4x8x8xbf16, #tpu.memory_space<vmem>>, vector<1x8x8xbf16>,
      %154 = vector.extract_strided_slice %128 {offsets = [0, 48], sizes = [8, 8], strides = [1, 1]} : vector<8x64xf32> to vector<8x8xf32>
      %155 = arith.truncf %154 : vector<8x8xf32> to vector<8x8xbf16>
      %c2_91 = arith.constant 2 : index
      %c0_92 = arith.constant 0 : index
      %c0_93 = arith.constant 0 : index
      %156 = vector.load %arg20[%c2_91, %c0_92, %c0_93] : memref<4x8x8xbf16, #tpu.memory_space<vmem>>, vector<1x8x8xbf16>
      %157 = vector.shape_cast %156 : vector<1x8x8xbf16> to vector<8x8xbf16>
      %158 = vector.shape_cast %155 : vector<8x8xbf16> to vector<1x8x8xbf16>
      tpu.vector_store %arg20[%c2_91, %c0_92, %c0_93], %158 {strides = array<i32>} : memref<4x8x8xbf16, #tpu.memory_space<vmem>>, vector<1x8x8xbf16>,
      %159 = vector.extract_strided_slice %128 {offsets = [0, 24], sizes = [8, 8], strides = [1, 1]} : vector<8x64xf32> to vector<8x8xf32>
      %160 = arith.truncf %159 : vector<8x8xf32> to vector<8x8xbf16>
      %c3_94 = arith.constant 3 : index
      %c0_95 = arith.constant 0 : index
      %c0_96 = arith.constant 0 : index
      %161 = vector.load %arg19[%c3_94, %c0_95, %c0_96] : memref<4x8x8xbf16, #tpu.memory_space<vmem>>, vector<1x8x8xbf16>
      %162 = vector.shape_cast %161 : vector<1x8x8xbf16> to vector<8x8xbf16>
      %163 = vector.shape_cast %160 : vector<8x8xbf16> to vector<1x8x8xbf16>
      tpu.vector_store %arg19[%c3_94, %c0_95, %c0_96], %163 {strides = array<i32>} : memref<4x8x8xbf16, #tpu.memory_space<vmem>>, vector<1x8x8xbf16>,
      %164 = vector.extract_strided_slice %128 {offsets = [0, 56], sizes = [8, 8], strides = [1, 1]} : vector<8x64xf32> to vector<8x8xf32>
      %165 = arith.truncf %164 : vector<8x8xf32> to vector<8x8xbf16>
      %c3_97 = arith.constant 3 : index
      %c0_98 = arith.constant 0 : index
      %c0_99 = arith.constant 0 : index
      %166 = vector.load %arg20[%c3_97, %c0_98, %c0_99] : memref<4x8x8xbf16, #tpu.memory_space<vmem>>, vector<1x8x8xbf16>
      %167 = vector.shape_cast %166 : vector<1x8x8xbf16> to vector<8x8xbf16>
      %168 = vector.shape_cast %165 : vector<8x8xbf16> to vector<1x8x8xbf16>
      tpu.vector_store %arg20[%c3_97, %c0_98, %c0_99], %168 {strides = array<i32>} : memref<4x8x8xbf16, #tpu.memory_space<vmem>>, vector<1x8x8xbf16>,
    } else {
    }
    %c0 = arith.constant 0 : index
    %c0_1 = arith.constant 0 : index
    %c0_2 = arith.constant 0 : index
    %3 = vector.load %arg2[%c0, %c0_1, %c0_2] : memref<1x8x32xf32, #tpu.memory_space<vmem>>, vector<1x8x32xf32>
    %4 = vector.shape_cast %3 : vector<1x8x32xf32> to vector<8x32xf32>
    %5 = arith.truncf %4 : vector<8x32xf32> to vector<8x32xbf16>
    %c0_3 = arith.constant 0 : index
    %c0_4 = arith.constant 0 : index
    %6 = vector.load %arg4[%c0_3, %c0_4] : memref<32x32xbf16, #tpu.memory_space<vmem>>, vector<32x32xbf16>
    %cst = arith.constant dense<0.000000e+00> : vector<8x32xf32>
    %7 = tpu.matmul %5, %6, %cst {dimension_numbers = #tpu.dot_dimension_numbers<[1], [0], [0], [1], [0, 0, 1, 1], [], []>} : vector<8x32xbf16>, vector<32x32xbf16>, vector<8x32xf32> -> vector<8x32xf32>
    %c0_5 = arith.constant 0 : index
    %c0_6 = arith.constant 0 : index
    %8 = vector.load %arg5[%c0_5, %c0_6] : memref<1x32xf32, #tpu.memory_space<vmem>>, vector<1x32xf32>
    %9 = vector.broadcast %8 : vector<1x32xf32> to vector<8x32xf32>
    %10 = arith.addf %7, %9 : vector<8x32xf32>
    %11 = vector.extract_strided_slice %10 {offsets = [0, 0], sizes = [8, 8], strides = [1, 1]} : vector<8x32xf32> to vector<8x8xf32>
    %12 = arith.truncf %11 : vector<8x8xf32> to vector<8x8xbf16>
    %c0_7 = arith.constant 0 : index
    %c0_8 = arith.constant 0 : index
    %c0_9 = arith.constant 0 : index
    %13 = vector.load %arg21[%c0_7, %c0_8, %c0_9] : memref<4x8x8xbf16, #tpu.memory_space<vmem>>, vector<1x8x8xbf16>
    %14 = vector.shape_cast %13 : vector<1x8x8xbf16> to vector<8x8xbf16>
    %15 = vector.shape_cast %12 : vector<8x8xbf16> to vector<1x8x8xbf16>
    tpu.vector_store %arg21[%c0_7, %c0_8, %c0_9], %15 {strides = array<i32>} : memref<4x8x8xbf16, #tpu.memory_space<vmem>>, vector<1x8x8xbf16>,
    %16 = vector.extract_strided_slice %10 {offsets = [0, 8], sizes = [8, 8], strides = [1, 1]} : vector<8x32xf32> to vector<8x8xf32>
    %17 = arith.truncf %16 : vector<8x8xf32> to vector<8x8xbf16>
    %c1 = arith.constant 1 : index
    %c0_10 = arith.constant 0 : index
    %c0_11 = arith.constant 0 : index
    %18 = vector.load %arg21[%c1, %c0_10, %c0_11] : memref<4x8x8xbf16, #tpu.memory_space<vmem>>, vector<1x8x8xbf16>
    %19 = vector.shape_cast %18 : vector<1x8x8xbf16> to vector<8x8xbf16>
    %20 = vector.shape_cast %17 : vector<8x8xbf16> to vector<1x8x8xbf16>
    tpu.vector_store %arg21[%c1, %c0_10, %c0_11], %20 {strides = array<i32>} : memref<4x8x8xbf16, #tpu.memory_space<vmem>>, vector<1x8x8xbf16>,
    %21 = vector.extract_strided_slice %10 {offsets = [0, 16], sizes = [8, 8], strides = [1, 1]} : vector<8x32xf32> to vector<8x8xf32>
    %22 = arith.truncf %21 : vector<8x8xf32> to vector<8x8xbf16>
    %c2 = arith.constant 2 : index
    %c0_12 = arith.constant 0 : index
    %c0_13 = arith.constant 0 : index
    %23 = vector.load %arg21[%c2, %c0_12, %c0_13] : memref<4x8x8xbf16, #tpu.memory_space<vmem>>, vector<1x8x8xbf16>
    %24 = vector.shape_cast %23 : vector<1x8x8xbf16> to vector<8x8xbf16>
    %25 = vector.shape_cast %22 : vector<8x8xbf16> to vector<1x8x8xbf16>
    tpu.vector_store %arg21[%c2, %c0_12, %c0_13], %25 {strides = array<i32>} : memref<4x8x8xbf16, #tpu.memory_space<vmem>>, vector<1x8x8xbf16>,
    %26 = vector.extract_strided_slice %10 {offsets = [0, 24], sizes = [8, 8], strides = [1, 1]} : vector<8x32xf32> to vector<8x8xf32>
    %27 = arith.truncf %26 : vector<8x8xf32> to vector<8x8xbf16>
    %c3 = arith.constant 3 : index
    %c0_14 = arith.constant 0 : index
    %c0_15 = arith.constant 0 : index
    %28 = vector.load %arg21[%c3, %c0_14, %c0_15] : memref<4x8x8xbf16, #tpu.memory_space<vmem>>, vector<1x8x8xbf16>
    %29 = vector.shape_cast %28 : vector<1x8x8xbf16> to vector<8x8xbf16>
    %30 = vector.shape_cast %27 : vector<8x8xbf16> to vector<1x8x8xbf16>
    tpu.vector_store %arg21[%c3, %c0_14, %c0_15], %30 {strides = array<i32>} : memref<4x8x8xbf16, #tpu.memory_space<vmem>>, vector<1x8x8xbf16>,
    %c0_16 = arith.constant 0 : index
    %c0_17 = arith.constant 0 : index
    %c0_18 = arith.constant 0 : index
    %31 = vector.load %arg21[%c0_16, %c0_17, %c0_18] : memref<4x8x8xbf16, #tpu.memory_space<vmem>>, vector<4x8x8xbf16>
    %c0_19 = arith.constant 0 : index
    %c0_20 = arith.constant 0 : index
    %c0_21 = arith.constant 0 : index
    %32 = vector.load %arg19[%c0_19, %c0_20, %c0_21] : memref<4x8x8xbf16, #tpu.memory_space<vmem>>, vector<4x8x8xbf16>
    %c0_22 = arith.constant 0 : index
    %c0_23 = arith.constant 0 : index
    %c0_24 = arith.constant 0 : index
    %33 = vector.load %arg20[%c0_22, %c0_23, %c0_24] : memref<4x8x8xbf16, #tpu.memory_space<vmem>>, vector<4x8x8xbf16>
    "tpu.trace_start"() <{level = 10 : i32, message = "hqd,hkd->hqk"}> : () -> ()
    %cst_25 = arith.constant dense<0.000000e+00> : vector<4x8x8xf32>
    %34 = tpu.matmul %31, %32, %cst_25 {dimension_numbers = #tpu.dot_dimension_numbers<[2], [2], [1], [1], [0, 0, 0, 1, 1, 1], [0], [0]>} : vector<4x8x8xbf16>, vector<4x8x8xbf16>, vector<4x8x8xf32> -> vector<4x8x8xf32>
    "tpu.trace_stop"() : () -> ()
    %cst_26 = arith.constant dense<0xFF800000> : vector<4x8xf32>
    %35 = vector.multi_reduction <maximumf>, %34, %cst_26 [2] : vector<4x8x8xf32> to vector<4x8xf32>
    %36 = vector.shape_cast %35 : vector<4x8xf32> to vector<4x8x1xf32>
    %37 = vector.broadcast %36 : vector<4x8x1xf32> to vector<4x8x8xf32>
    %38 = arith.subf %34, %37 : vector<4x8x8xf32>
    %39 = math.exp %38 : vector<4x8x8xf32>
    %cst_27 = arith.constant dense<0.000000e+00> : vector<4x8xf32>
    %40 = vector.multi_reduction <add>, %39, %cst_27 [2] : vector<4x8x8xf32> to vector<4x8xf32>
    %41 = vector.shape_cast %40 : vector<4x8xf32> to vector<4x8x1xf32>
    %42 = tpu.reciprocal %41 {approx = true} : vector<4x8x1xf32> -> vector<4x8x1xf32>
    %43 = vector.broadcast %42 : vector<4x8x1xf32> to vector<4x8x8xf32>
    %44 = arith.mulf %39, %43 : vector<4x8x8xf32>
    %45 = arith.truncf %44 : vector<4x8x8xf32> to vector<4x8x8xbf16>
    "tpu.trace_start"() <{level = 10 : i32, message = "hqk,hkd->hqd"}> : () -> ()
    %cst_28 = arith.constant dense<0.000000e+00> : vector<4x8x8xf32>
    %46 = tpu.matmul %45, %33, %cst_28 {dimension_numbers = #tpu.dot_dimension_numbers<[2], [1], [1], [2], [0, 0, 0, 1, 1, 2], [0], [0]>} : vector<4x8x8xbf16>, vector<4x8x8xbf16>, vector<4x8x8xf32> -> vector<4x8x8xf32>
    "tpu.trace_stop"() : () -> ()
    %47 = arith.truncf %46 : vector<4x8x8xf32> to vector<4x8x8xbf16>
    %c0_29 = arith.constant 0 : index
    %c0_30 = arith.constant 0 : index
    %c0_31 = arith.constant 0 : index
    %48 = vector.load %arg8[%c0_29, %c0_30, %c0_31] : memref<4x8x32xbf16, #tpu.memory_space<vmem>>, vector<4x8x32xbf16>
    "tpu.trace_start"() <{level = 10 : i32, message = "hqd,hdo->hqo"}> : () -> ()
    %cst_32 = arith.constant dense<0.000000e+00> : vector<4x8x32xf32>
    %49 = tpu.matmul %47, %48, %cst_32 {dimension_numbers = #tpu.dot_dimension_numbers<[2], [1], [1], [2], [0, 0, 0, 1, 1, 2], [0], [0]>} : vector<4x8x8xbf16>, vector<4x8x32xbf16>, vector<4x8x32xf32> -> vector<4x8x32xf32>
    "tpu.trace_stop"() : () -> ()
    %cst_33 = arith.constant dense<0.000000e+00> : vector<8x32xf32>
    %50 = vector.multi_reduction <add>, %49, %cst_33 [0] : vector<4x8x32xf32> to vector<8x32xf32>
    %c0_34 = arith.constant 0 : index
    %c0_35 = arith.constant 0 : index
    %51 = vector.load %arg9[%c0_34, %c0_35] : memref<1x32xf32, #tpu.memory_space<vmem>>, vector<1x32xf32>
    %52 = vector.broadcast %51 : vector<1x32xf32> to vector<8x32xf32>
    %53 = arith.addf %50, %52 : vector<8x32xf32>
    %54 = arith.addf %4, %53 : vector<8x32xf32>
    %c0_36 = arith.constant 0 : index
    %c0_37 = arith.constant 0 : index
    %55 = vector.load %arg14[%c0_36, %c0_37] : memref<1x32xf32, #tpu.memory_space<vmem>>, vector<1x32xf32>
    %c0_38 = arith.constant 0 : index
    %c0_39 = arith.constant 0 : index
    %56 = vector.load %arg15[%c0_38, %c0_39] : memref<1x32xf32, #tpu.memory_space<vmem>>, vector<1x32xf32>
    %cst_40 = arith.constant dense<0.000000e+00> : vector<8xf32>
    %57 = vector.multi_reduction <add>, %54, %cst_40 [1] : vector<8x32xf32> to vector<8xf32>
    %58 = vector.shape_cast %57 : vector<8xf32> to vector<8x1xf32>
    %cst_41 = arith.constant 3.200000e+01 : f32
    %59 = vector.broadcast %cst_41 : f32 to vector<8x1xf32>
    %60 = arith.divf %58, %59 : vector<8x1xf32>
    %61 = vector.broadcast %60 : vector<8x1xf32> to vector<8x32xf32>
    %62 = arith.subf %54, %61 : vector<8x32xf32>
    %63 = arith.mulf %62, %62 : vector<8x32xf32>
    %cst_42 = arith.constant dense<0.000000e+00> : vector<8xf32>
    %64 = vector.multi_reduction <add>, %63, %cst_42 [1] : vector<8x32xf32> to vector<8xf32>
    %65 = vector.shape_cast %64 : vector<8xf32> to vector<8x1xf32>
    %cst_43 = arith.constant 3.200000e+01 : f32
    %66 = vector.broadcast %cst_43 : f32 to vector<8x1xf32>
    %67 = arith.divf %65, %66 : vector<8x1xf32>
    %68 = vector.broadcast %60 : vector<8x1xf32> to vector<8x32xf32>
    %69 = arith.subf %54, %68 : vector<8x32xf32>
    %cst_44 = arith.constant 9.99999974E-6 : f32
    %70 = vector.broadcast %cst_44 : f32 to vector<8x1xf32>
    %71 = arith.addf %67, %70 : vector<8x1xf32>
    %72 = math.rsqrt %71 : vector<8x1xf32>
    %73 = vector.broadcast %72 : vector<8x1xf32> to vector<8x32xf32>
    %74 = arith.mulf %69, %73 : vector<8x32xf32>
    %75 = vector.broadcast %55 : vector<1x32xf32> to vector<8x32xf32>
    %76 = arith.mulf %74, %75 : vector<8x32xf32>
    %77 = vector.broadcast %56 : vector<1x32xf32> to vector<8x32xf32>
    %78 = arith.addf %76, %77 : vector<8x32xf32>
    %79 = arith.truncf %78 : vector<8x32xf32> to vector<8x32xbf16>
    %c0_45 = arith.constant 0 : index
    %c0_46 = arith.constant 0 : index
    %80 = vector.load %arg10[%c0_45, %c0_46] : memref<32x64xbf16, #tpu.memory_space<vmem>>, vector<32x64xbf16>
    %cst_47 = arith.constant dense<0.000000e+00> : vector<8x64xf32>
    %81 = tpu.matmul %79, %80, %cst_47 {dimension_numbers = #tpu.dot_dimension_numbers<[1], [0], [0], [1], [0, 0, 1, 1], [], []>} : vector<8x32xbf16>, vector<32x64xbf16>, vector<8x64xf32> -> vector<8x64xf32>
    %c0_48 = arith.constant 0 : index
    %c0_49 = arith.constant 0 : index
    %82 = vector.load %arg11[%c0_48, %c0_49] : memref<1x64xf32, #tpu.memory_space<vmem>>, vector<1x64xf32>
    %83 = vector.broadcast %82 : vector<1x64xf32> to vector<8x64xf32>
    %84 = arith.addf %81, %83 : vector<8x64xf32>
    %cst_50 = arith.constant 0.000000e+00 : f32
    %85 = vector.broadcast %cst_50 : f32 to vector<8x64xf32>
    %86 = arith.maximumf %84, %85 : vector<8x64xf32>
    %87 = arith.truncf %86 : vector<8x64xf32> to vector<8x64xbf16>
    %c0_51 = arith.constant 0 : index
    %c0_52 = arith.constant 0 : index
    %88 = vector.load %arg12[%c0_51, %c0_52] : memref<64x32xbf16, #tpu.memory_space<vmem>>, vector<64x32xbf16>
    %cst_53 = arith.constant dense<0.000000e+00> : vector<8x32xf32>
    %89 = tpu.matmul %87, %88, %cst_53 {dimension_numbers = #tpu.dot_dimension_numbers<[1], [0], [0], [1], [0, 0, 1, 1], [], []>} : vector<8x64xbf16>, vector<64x32xbf16>, vector<8x32xf32> -> vector<8x32xf32>
    %c0_54 = arith.constant 0 : index
    %c0_55 = arith.constant 0 : index
    %90 = vector.load %arg13[%c0_54, %c0_55] : memref<1x32xf32, #tpu.memory_space<vmem>>, vector<1x32xf32>
    %91 = vector.broadcast %90 : vector<1x32xf32> to vector<8x32xf32>
    %92 = arith.addf %89, %91 : vector<8x32xf32>
    %93 = arith.addf %78, %92 : vector<8x32xf32>
    %c0_56 = arith.constant 0 : index
    %c0_57 = arith.constant 0 : index
    %94 = vector.load %arg16[%c0_56, %c0_57] : memref<1x32xf32, #tpu.memory_space<vmem>>, vector<1x32xf32>
    %c0_58 = arith.constant 0 : index
    %c0_59 = arith.constant 0 : index
    %95 = vector.load %arg17[%c0_58, %c0_59] : memref<1x32xf32, #tpu.memory_space<vmem>>, vector<1x32xf32>
    %cst_60 = arith.constant dense<0.000000e+00> : vector<8xf32>
    %96 = vector.multi_reduction <add>, %93, %cst_60 [1] : vector<8x32xf32> to vector<8xf32>
    %97 = vector.shape_cast %96 : vector<8xf32> to vector<8x1xf32>
    %cst_61 = arith.constant 3.200000e+01 : f32
    %98 = vector.broadcast %cst_61 : f32 to vector<8x1xf32>
    %99 = arith.divf %97, %98 : vector<8x1xf32>
    %100 = vector.broadcast %99 : vector<8x1xf32> to vector<8x32xf32>
    %101 = arith.subf %93, %100 : vector<8x32xf32>
    %102 = arith.mulf %101, %101 : vector<8x32xf32>
    %cst_62 = arith.constant dense<0.000000e+00> : vector<8xf32>
    %103 = vector.multi_reduction <add>, %102, %cst_62 [1] : vector<8x32xf32> to vector<8xf32>
    %104 = vector.shape_cast %103 : vector<8xf32> to vector<8x1xf32>
    %cst_63 = arith.constant 3.200000e+01 : f32
    %105 = vector.broadcast %cst_63 : f32 to vector<8x1xf32>
    %106 = arith.divf %104, %105 : vector<8x1xf32>
    %107 = vector.broadcast %99 : vector<8x1xf32> to vector<8x32xf32>
    %108 = arith.subf %93, %107 : vector<8x32xf32>
    %cst_64 = arith.constant 9.99999974E-6 : f32
    %109 = vector.broadcast %cst_64 : f32 to vector<8x1xf32>
    %110 = arith.addf %106, %109 : vector<8x1xf32>
    %111 = math.rsqrt %110 : vector<8x1xf32>
    %112 = vector.broadcast %111 : vector<8x1xf32> to vector<8x32xf32>
    %113 = arith.mulf %108, %112 : vector<8x32xf32>
    %114 = vector.broadcast %94 : vector<1x32xf32> to vector<8x32xf32>
    %115 = arith.mulf %113, %114 : vector<8x32xf32>
    %116 = vector.broadcast %95 : vector<1x32xf32> to vector<8x32xf32>
    %117 = arith.addf %115, %116 : vector<8x32xf32>
    %c0_65 = arith.constant 0 : index
    %c0_66 = arith.constant 0 : index
    %c0_67 = arith.constant 0 : index
    %118 = vector.load %arg18[%c0_65, %c0_66, %c0_67] : memref<1x8x32xf32, #tpu.memory_space<vmem>>, vector<1x8x32xf32>
    %119 = vector.shape_cast %118 : vector<1x8x32xf32> to vector<8x32xf32>
    %120 = vector.shape_cast %117 : vector<8x32xf32> to vector<1x8x32xf32>
    tpu.vector_store %arg18[%c0_65, %c0_66, %c0_67], %120 {strides = array<i32>} : memref<1x8x32xf32, #tpu.memory_space<vmem>>, vector<1x8x32xf32>,
    return
  }
  func.func @transform_0(%arg0: i32, %arg1: i32) -> (i32, i32, i32) {
    %c0_i32 = arith.constant 0 : i32
    %c0_i32_0 = arith.constant 0 : i32
    return %arg0, %arg1, %c0_i32 : i32, i32, i32
  }
  func.func @transform_1(%arg0: i32, %arg1: i32) -> (i32, i32, i32) {
    %c0_i32 = arith.constant 0 : i32
    %c0_i32_0 = arith.constant 0 : i32
    %c0_i32_1 = arith.constant 0 : i32
    return %arg0, %c0_i32, %c0_i32_0 : i32, i32, i32
  }
  func.func @transform_2(%arg0: i32, %arg1: i32) -> (i32, i32) {
    %c0_i32 = arith.constant 0 : i32
    %c0_i32_0 = arith.constant 0 : i32
    %c0_i32_1 = arith.constant 0 : i32
    return %c0_i32, %c0_i32_0 : i32, i32
  }
  func.func @transform_3(%arg0: i32, %arg1: i32) -> (i32, i32) {
    %c0_i32 = arith.constant 0 : i32
    %c0_i32_0 = arith.constant 0 : i32
    %c0_i32_1 = arith.constant 0 : i32
    return %c0_i32, %c0_i32_0 : i32, i32
  }
  func.func @transform_4(%arg0: i32, %arg1: i32) -> (i32, i32) {
    %c0_i32 = arith.constant 0 : i32
    %c0_i32_0 = arith.constant 0 : i32
    %c0_i32_1 = arith.constant 0 : i32
    return %c0_i32, %c0_i32_0 : i32, i32
  }
  func.func @transform_5(%arg0: i32, %arg1: i32) -> (i32, i32) {
    %c0_i32 = arith.constant 0 : i32
    %c0_i32_0 = arith.constant 0 : i32
    %c0_i32_1 = arith.constant 0 : i32
    return %c0_i32, %c0_i32_0 : i32, i32
  }
  func.func @transform_6(%arg0: i32, %arg1: i32) -> (i32, i32, i32) {
    %c0_i32 = arith.constant 0 : i32
    %c0_i32_0 = arith.constant 0 : i32
    %c0_i32_1 = arith.constant 0 : i32
    %c0_i32_2 = arith.constant 0 : i32
    return %c0_i32, %c0_i32_0, %c0_i32_1 : i32, i32, i32
  }
  func.func @transform_7(%arg0: i32, %arg1: i32) -> (i32, i32) {
    %c0_i32 = arith.constant 0 : i32
    %c0_i32_0 = arith.constant 0 : i32
    %c0_i32_1 = arith.constant 0 : i32
    return %c0_i32, %c0_i32_0 : i32, i32
  }
  func.func @transform_8(%arg0: i32, %arg1: i32) -> (i32, i32) {
    %c0_i32 = arith.constant 0 : i32
    %c0_i32_0 = arith.constant 0 : i32
    %c0_i32_1 = arith.constant 0 : i32
    return %c0_i32, %c0_i32_0 : i32, i32
  }
  func.func @transform_9(%arg0: i32, %arg1: i32) -> (i32, i32) {
    %c0_i32 = arith.constant 0 : i32
    %c0_i32_0 = arith.constant 0 : i32
    %c0_i32_1 = arith.constant 0 : i32
    return %c0_i32, %c0_i32_0 : i32, i32
  }
  func.func @transform_10(%arg0: i32, %arg1: i32) -> (i32, i32) {
    %c0_i32 = arith.constant 0 : i32
    %c0_i32_0 = arith.constant 0 : i32
    %c0_i32_1 = arith.constant 0 : i32
    return %c0_i32, %c0_i32_0 : i32, i32
  }
  func.func @transform_11(%arg0: i32, %arg1: i32) -> (i32, i32) {
    %c0_i32 = arith.constant 0 : i32
    %c0_i32_0 = arith.constant 0 : i32
    %c0_i32_1 = arith.constant 0 : i32
    return %c0_i32, %c0_i32_0 : i32, i32
  }
  func.func @transform_12(%arg0: i32, %arg1: i32) -> (i32, i32) {
    %c0_i32 = arith.constant 0 : i32
    %c0_i32_0 = arith.constant 0 : i32
    %c0_i32_1 = arith.constant 0 : i32
    return %c0_i32, %c0_i32_0 : i32, i32
  }
  func.func @transform_13(%arg0: i32, %arg1: i32) -> (i32, i32) {
    %c0_i32 = arith.constant 0 : i32
    %c0_i32_0 = arith.constant 0 : i32
    %c0_i32_1 = arith.constant 0 : i32
    return %c0_i32, %c0_i32_0 : i32, i32
  }
  func.func @transform_14(%arg0: i32, %arg1: i32) -> (i32, i32) {
    %c0_i32 = arith.constant 0 : i32
    %c0_i32_0 = arith.constant 0 : i32
    %c0_i32_1 = arith.constant 0 : i32
    return %c0_i32, %c0_i32_0 : i32, i32
  }
  func.func @transform_15(%arg0: i32, %arg1: i32) -> (i32, i32) {
    %c0_i32 = arith.constant 0 : i32
    %c0_i32_0 = arith.constant 0 : i32
    %c0_i32_1 = arith.constant 0 : i32
    return %c0_i32, %c0_i32_0 : i32, i32
  }
  func.func @transform_16(%arg0: i32, %arg1: i32) -> (i32, i32, i32) {
    %c0_i32 = arith.constant 0 : i32
    %c0_i32_0 = arith.constant 0 : i32
    return %arg0, %arg1, %c0_i32 : i32, i32, i32
  }
}

</mosaic_0001>

<bundles_post_ra>
// kernel: tpu_custom_call.1
= control target key start
LH: loop header
LB: loop body
LE: loop exit
PB: predicated region body
PF: predicated region fallthrough
CT: control target
= control target key end

     0   :  { %s2853_s0 = inlined_call_operand.vmem [shape: f32[2,8,32], index: 0, kind: input, shape index: {}]   ;;  %s2854_s1 = inlined_call_operand.vmem [shape: f32[2,8,32], index: 1, kind: input, shape index: {}]   ;;  %s2855_s2 = inlined_call_operand.vmem [shape: bf16[32,32], index: 2, kind: input, shape index: {}]   ;;  %s2856_s3 = inlined_call_operand.vmem [shape: f32[1,32], index: 3, kind: input, shape index: {}]   ;;  %s2857_s4 = inlined_call_operand.hbm [shape: bf16[32,64], index: 4, kind: input, shape index: {}]   ;;  %s2858_s5 = inlined_call_operand.vmem [shape: f32[1,64], index: 5, kind: input, shape index: {}]   ;;  %s2859_s6 = inlined_call_operand.hbm [shape: bf16[4,8,32], index: 6, kind: input, shape index: {}]   ;;  %s2860_s7 = inlined_call_operand.hbm [shape: f32[1,32], index: 7, kind: input, shape index: {}]   ;;  %s2861_s8 = inlined_call_operand.hbm [shape: bf16[32,64], index: 8, kind: input, shape index: {}]   ;;  %s2862_s9 = inlined_call_operand.hbm [shape: f32[1,64], index: 9, kind: input, shape index: {}]   ;;  %s2863_s10 = inlined_call_operand.vmem [shape: bf16[64,32], index: 10, kind: input, shape index: {}]   ;;  %s2864_s11 = inlined_call_operand.vmem [shape: f32[1,32], index: 11, kind: input, shape index: {}]   ;;  %s2865_s12 = inlined_call_operand.vmem [shape: f32[1,32], index: 12, kind: input, shape index: {}]   ;;  %s2866_s13 = inlined_call_operand.vmem [shape: f32[1,32], index: 13, kind: input, shape index: {}]   ;;  %s2867_s14 = inlined_call_operand.vmem [shape: f32[1,32], index: 14, kind: input, shape index: {}]   ;;  %s2868_s15 = inlined_call_operand.vmem [shape: f32[1,32], index: 15, kind: input, shape index: {}]   ;;  %s2869_s16 = inlined_call_operand.hbm [shape: f32[2,8,32], index: 16, kind: output, shape index: {}]  }
   0x1   :  { %2878 = sst [smem:[#allocation26_spill]] %s2853_s0 }
   0x2   :  { %2879 = sst [smem:[#allocation27_spill]] %s2854_s1 }
   0x3   :  { %2880 = sst [smem:[#allocation28_spill]] %s2859_s6 }
   0x4   :  { %2881 = sst [smem:[#allocation29_spill]] %s2868_s15 }
   0x5   :  { %2882 = sst [smem:[#allocation30_spill]] %s2869_s16 }
   0x6   :  { %21 = vsyncpa [#allocation6], 0 }
   0x7   :  { %22 = vsyncpa [#allocation9], 0 }
   0x8   :  { %23 = vsyncpa [#allocation12], 0 }
   0x9   :  { %24 = vsyncpa [#allocation7], 0 }
   0xa   :  { %26 = vsyncpa [#allocation7 + $0x1], 0  ;;  %s2507_s21 = smov 0   ;;  %s2509_s22 = smov 0  }
   0xb   :  { %s2511_s23 = smov 0   ;;  %s2513_s24 = smov 0  }
   0xc   :  { %s2515_s25 = smov 0   ;;  %s2517_s26 = smov 0  }
   0xd LB: > { %2883 = sst [smem:[#allocation19_spill]] %s2383_s21  ;;  %s1831_s27 = sadd.s32 4294967295, %s2403_s26   ;;  %s2403_s26 = sphi %s2517_s26, %s32_s26   ;;  %s2399_s25 = sphi %s2515_s25, %s2909_s25   ;;  %s2395_s24 = sphi %s2513_s24, %s2908_s24   ;;  %s2391_s23 = sphi %s2511_s23, %s2907_s23   ;;  %s2387_s22 = sphi %s2509_s22, %s2911_s22   ;;  %s2383_s21 = sphi %s2507_s21, %s2910_s21  }
   0xe   : > { %2884 = sst [smem:[#allocation20_spill]] %s2391_s23  ;;  %s1832_s28 = sadd.s32 4294967294, %s2403_s26  }
   0xf   : > { %2885 = sst [smem:[#allocation21_spill]] %s2399_s25  ;;  %s44_s29 = sadd.s32 1, %s2399_s25 }
  0x10   : > { %2886 = sst [smem:[#allocation22_spill]] %s2403_s26  ;;  %s401_s30 = sadd.s32 1, %s2391_s23 }
  0x11   : > { %p46_p0 = scmp.ge.s32.totalorder %s44_s29, 2  ;;  %p411_p1 = scmp.ne.s32.totalorder %s2391_s23, %s2387_s22 }
  0x12   : > { %p412_p2 = scmp.eq.s32.totalorder %s1831_s27, 1  ;;  %p417_p3 = scmp.ne.s32.totalorder %s2387_s22, %s2383_s21 }
  0x13   : > { %s2913_s29 = smov (%p46_p0, %s44_s29), 0  ;;  %p418_p5 = scmp.eq.s32.totalorder %s1832_s28, 1 }
  0x14   : > { %2887 = sst [smem:[#allocation23_spill]] %s2913_s29  ;;  %p2547_p4 = por %p412_p2, %p411_p1 }
  0x15   : > { %s396_s17 = ssub.s32 %s2399_s25, %s2913_s29  ;;  %p1833_p6 = scmp.ge.s32.totalorder %s2403_s26, 1 }
  0x16   : > { %p399_p7 = scmp.eq.s32.totalorder %s396_s17, 0  ;;  %p2554_p8 = por %p418_p5, %p417_p3 }
  0x17   : > { %p425_p9 = scmp.lt.s32.totalorder %s2403_s26, 3  ;;  %p2566_p11 = scmp.eq.s32.totalorder %s1831_s27, 0 }
  0x18   : > { %s2889_s18 = scalar_select %p2554_p8, 1, 0 }
  0x19   : > { %s2560_s19 = scalar_select %p399_p7, %s2391_s23, %s401_s30  }
  0x1a   : > { %2890 = sst [smem:[#allocation24_spill]] %s2889_s18  ;;  %p2562_p10 = pnand %p1833_p6, %p425_p9 }
  0x1b   : > { %2891 = sst [smem:[#allocation25_spill]] %s2560_s19  ;;  %s2405_s28 = smov [#allocation8]  }
  0x1c   : > { %p2060_p12 = pneg %p2562_p10  ;;  %s459_s17 = sshll.u32 %s2405_s28, 4  ;;  %s460_s17 = int_to_ptr.vmem [resolvable:$true] %s459_s17 }
  0x1d   : > { %s2406_s30 = smov [#allocation11]   ;;  %s2196_s19 = scalar_lea.vmem %s460_s17, 256 }
  0x1e   : > { %p2574_p13 = pnand %p2566_p11, %p2060_p12  ;;  %s483_s25 = sshll.u32 %s2406_s30, 4  ;;  %s484_s25 = int_to_ptr.vmem [resolvable:$true] %s483_s25 }
  0x1f   : > { %p2197_p1 = scmp.ne.s32.totalorder %s460_s17, %s2196_s19  ;;  %p2204_p5 = scmp.lt.s32.totalorder %s460_s17, %s460_s17 }
  0x20   : > { %p2580_p0 = pneg %p2574_p13  ;;  %p2205_p6 = scmp.lt.s32.totalorder %s2196_s19, %s2196_s19 }
  0x22   : > { %p2199_p2 = pnand %p2197_p1, %p2580_p0  ;;  %p2206_p7 = por %p2205_p6, %p2204_p5 }
  0x24   : > { %p2200_p3 = pneg %p2199_p2 }
  0x26   : > { %p2207_p9 = pnand %p2206_p7, %p2200_p3 }
  0x28   : > { %2210 = shalt.err (!%p2207_p9)
}
  0x29   : > { %s2407_s28 = smov 64   ;;  %s2408_s30 = smov 4  }
  0x2a   : > { %s2896_s6 = sld [smem:[#allocation28_spill]]  ;;  %s2222_s26 = scalar_lea.vmem %s484_s25, 256 }
  0x2b   : > { %p2223_p12 = scmp.ne.s32.totalorder %s484_s25, %s2222_s26  ;;  %p2230_p5 = scmp.lt.s32.totalorder %s484_s25, %s484_s25 }
  0x2c   : > { %p2231_p3 = scmp.lt.s32.totalorder %s2222_s26, %s2222_s26 }
  0x2d   : > { %p2225_p1 = pnand %p2223_p12, %p2580_p0 }
  0x2e   : > { %p2232_p6 = por %p2231_p3, %p2230_p5 }
  0x2f   : > { %p2226_p2 = pneg %p2225_p1 }
  0x30   : > { %2066 = dma.hbm_to_vmem [thread:$0]  (!%p2574_p13), %s2896_s6, 256, %s460_s17, [#allocation9], %s2407_s28, %s2407_s28, %s2408_s30  }
  0x31   : > { %p2233_p7 = pnand %p2232_p6, %p2226_p2 }
  0x33   : > { %2236 = shalt.err (!%p2233_p7)
}
  0x34   : > { %2072 = dma.hbm_to_vmem [thread:$0]  (!%p2574_p13), %s2861_s8, 256, %s484_s25, [#allocation12], %s2407_s28, %s2407_s28, %s2408_s30  }
  0x35   : > { %s2409_s23 = smov [#allocation5]   ;;  %s2410_s17 = smov [#allocation10]  }
  0x36   : > { %s443_s18 = sshll.u32 %s2409_s23, 4  ;;  %s473_s6 = sshll.u32 %s2410_s17, 4  ;;  %s444_s18 = int_to_ptr.vmem [resolvable:$true] %s443_s18  ;;  %s474_s6 = int_to_ptr.vmem [resolvable:$true] %s473_s6 }
  0x37   : > { %s2248_s15 = scalar_lea.vmem %s444_s18, 256  ;;  %p2256_p2 = scmp.lt.s32.totalorder %s444_s18, %s444_s18 }
  0x38   : > { %p2249_p9 = scmp.ne.s32.totalorder %s444_s18, %s2248_s15  ;;  %p2257_p5 = scmp.lt.s32.totalorder %s2248_s15, %s2248_s15 }
  0x3a   : > { %p2251_p12 = pnand %p2249_p9, %p2580_p0  ;;  %p2258_p3 = por %p2257_p5, %p2256_p2 }
  0x3c   : > { %p2252_p1 = pneg %p2251_p12 }
  0x3e   : > { %p2259_p6 = pnand %p2258_p3, %p2252_p1 }
  0x40   : > { %2262 = shalt.err (!%p2259_p6)
}
  0x41   : > { %2063 = dma.hbm_to_vmem [thread:$0]  (!%p2574_p13), %s2857_s4, 256, %s444_s18, [#allocation6], %s2407_s28, %s2407_s28, %s2408_s30  }
  0x42   : > { %s2274_s26 = scalar_lea.vmem %s474_s6, 16  ;;  %s2281_s15 = scalar_lea.vmem %s474_s6, 32 }
  0x43   : > { %p2275_p7 = scmp.ne.s32.totalorder %s474_s6, %s2274_s26  ;;  %p2282_p2 = scmp.lt.s32.totalorder %s474_s6, %s474_s6 }
  0x44   : > { %p2283_p1 = scmp.lt.s32.totalorder %s2281_s15, %s2274_s26 }
  0x45   : > { %p2277_p9 = pnand %p2275_p7, %p2580_p0 }
  0x46   : > { %p2284_p5 = por %p2283_p1, %p2282_p2 }
  0x47   : > { %p2278_p12 = pneg %p2277_p9 }
  0x49   : > { %p2285_p3 = pnand %p2284_p5, %p2278_p12 }
  0x4b   : > { %2288 = shalt.err (!%p2285_p3)
}
  0x4c   : > { %2069 = dma.hbm_to_vmem [thread:$0]  (!%p2574_p13), %s2860_s7, 16, %s474_s6, [#allocation9]  }
  0x4d   : > { %s2411_s28 = smov [#allocation13]  }
  0x4e   : > { %s497_s30 = sshll.u32 %s2411_s28, 4  ;;  %s498_s30 = int_to_ptr.vmem [resolvable:$true] %s497_s30 }
  0x4f   : > { %s2300_s18 = scalar_lea.vmem %s498_s30, 16  ;;  %s2307_s17 = scalar_lea.vmem %s498_s30, 32 }
  0x50   : > { %p2301_p6 = scmp.ne.s32.totalorder %s498_s30, %s2300_s18  ;;  %p2308_p8 = scmp.lt.s32.totalorder %s498_s30, %s498_s30 }
  0x51   : > { %p2309_p2 = scmp.lt.s32.totalorder %s2307_s17, %s2300_s18 }
  0x52   : > { %p2303_p7 = pnand %p2301_p6, %p2580_p0 }
  0x53   : > { %p2310_p12 = por %p2309_p2, %p2308_p8 }
  0x54   : > { %p2304_p9 = pneg %p2303_p7 }
  0x56   : > { %p2311_p1 = pnand %p2310_p12, %p2304_p9 }
  0x58   : > { %2314 = shalt.err (!%p2311_p1)
}
  0x59   : > { %2075 = dma.hbm_to_vmem [thread:$0]  (!%p2574_p13), %s2862_s9, 16, %s498_s30, [#allocation12]  }
  0x5a   : > { %545 = sbr.rel (%p2562_p10) target bundleno = 2382 (0x94e), region = 84 }
  0x5f   : > { %2366 = dma.done.wait (%p2566_p11), [#allocation6], 256  }
  0x60   : > { %2368 = vsyncadd (%p2566_p11), [#allocation6], 4294967040 }
  0x61   : > { %2370 = dma.done.wait (%p2566_p11), [#allocation9], 272  }
  0x62   : > { %2372 = vsyncadd (%p2566_p11), [#allocation9], 4294967024 }
  0x63   : > { %2374 = dma.done.wait (%p2566_p11), [#allocation12], 272  }
  0x64   : > { %2376 = vsyncadd (%p2566_p11), [#allocation12], 4294967024  ;;  %p617_p8 = scmp.lt.s32.totalorder %s2395_s24, 1  ;;  %v2412_v0 = vmov 0.0   ;;  %vm2413_vm0 = vmmov 0   ;;  %v2155_v1 = vld [vmem:[#allocation5 + $0x8] sm:$0xff]  }
  0x65   : > { %1930 = vmatprep.subr.bf16.mxu0 %v2412_v0  ;;  %1938 = vmatprep.subr.bf16.mxu1 %v2412_v0  ;;  %v2156_v2 = vld [vmem:[%s2855_s2 + $0x8] sm:$0xff]   ;;  %s2897_s1 = sld [smem:[#allocation27_spill]]  ;;  %v2157_v3 = vld [vmem:[#allocation5] sm:$0xff]   ;;  %v2158_v4 = vld [vmem:[%s2855_s2] sm:$0xff]   ;;  %vm658_vm1 = vcmask 261120   ;;  %vm703_vm2 = vcmask 60416  }
  0x66   : > { %1934 = vmatprep.mubr.msk.bf16.mxu0 %vm2413_vm0, %v2412_v0  ;;  %s618_s6 = scalar_select %p617_p8, %s2395_s24, 1  ;;  %1942 = vmatprep.mubr.msk.bf16.mxu1 %vm2413_vm0, %v2412_v0  ;;  %v1849_v9 = vld [vmem:[%s2858_s5] ss:$0 sm:$0xff]  ;;  %vm844_vm3 = vcmask 64512   ;;  %vm1080_vm4 = vcmask 1043456   ;;  %vm1608_vm5 = vcmask 523264  }
  0x67   : > { %s2898_s28 = sld [smem:[#allocation26_spill]]  ;;  %1931 = vmatpush3.bf16.msra.mxu0 %v2155_v1  ;;  %1939 = vmatpush3.bf16.msra.mxu1 %v2156_v2  ;;  %v1854_v10 = vld [vmem:[%s2856_s3] ss:$0 sm:$0xff]  ;;  %s2414_s21 = smov 104  }
  0x68   : > { %s1847_s29 = sshll.u32 %s618_s6, 3  ;;  %1932 = vmatprep.subr.bf16.mxu0 %v2412_v0  ;;  %1940 = vmatprep.subr.bf16.mxu1 %v2412_v0  ;;  %s2415_s20 = smov 120  }
  0x69   : > { %s2416_s27 = smov 112   ;;  %s2417_s26 = smov 96  }
  0x6a   : > { %s2419_s19 = smov 72   ;;  %s2420_s23 = smov 88  }
  0x6b   : > { %s627_s15 = scalar_lea.vmem %s2897_s1, %s1847_s29  ;;  %1933 = vmatpush3.bf16.msra.mxu0 %v2157_v3  ;;  %1941 = vmatpush3.bf16.msra.mxu1 %v2158_v4  ;;  %s2899_s25 = sld [smem:[#allocation29_spill]] }
  0x6c   : > { %v633_v5 = vld [vmem:[%s627_s15] sm:$0xff]  ;;  %1946 = vmatprep.subr.bf16.mxu0 %v2412_v0  ;;  %1952 = vmatprep.subr.bf16.mxu1 %v2412_v0  ;;  %s2418_s15 = smov 80   ;;  %s1887_s6 = sshll.u32 %s2395_s24, 7 }
  0x6d   : > { %s623_s30 = scalar_lea.vmem %s2898_s28, %s1847_s29  ;;  %v634_v7 = vpack.c.bf16 %v633_v5, %v633_v5  ;;  %s2421_s18 = smov [#allocation14]  }
  0x6e   : > { %v2664_v6 = vld [vmem:[%s623_s30] sm:$0xff]  ;;  %s2319_s17 = sshll.u32 %s2421_s18, 4  ;;  %s2320_s17 = int_to_ptr.vmem [resolvable:$false] %s2319_s17 }
  0x6f   : > { %v743_v8 = vpack.c.bf16 %v2664_v6, %v2664_v6  ;;  %1935 = vmatmul.mubr.msk.bf16.vlgmr.msra.gmra.mxu0 %vm658_vm1, %v634_v7  ;;  %s2321_s24 = scalar_lea.vmem %s2320_s17, 256 }
  0x70   : > { %1948 = vmatprep.mubr.msk.bf16.mxu0 %vm2413_vm0, %v2412_v0 }
  0x71   : > { %1943 = vmatmul.mubr.msk.bf16.vlgmr.msra.gmra.mxu1 %vm658_vm1, %v743_v8 }
  0x72   : > { %1954 = vmatprep.mubr.msk.bf16.mxu1 %vm2413_vm0, %v2412_v0 }
 0x12f   : > { %v696_v11 = vpop.f32.mrf.mxu0 }
 0x130   : > { %v697_v12 = vadd.f32 %v1849_v9, %v696_v11 }
 0x131   : > { %v805_v13 = vpop.f32.mrf.mxu1  ;;  %v1936_v14 = vpop.f32.mrf.mxu0 }
 0x132   : > { %v806_v15 = vadd.f32 %v1854_v10, %v805_v13  ;;  %v2682_v16 = vpack.c.bf16 %v697_v12, %v697_v12 }
 0x133   : > { %v1944_v17 = vpop.f32.mrf.mxu1  ;;  %v699_v19 = vpop.f32.mrf.mxu0 }
 0x134   : > { %v811_v18 = vpack.c.bf16 %v806_v15, %v806_v15  ;;  %704 = vst.msk [vmem:[#allocation2] sm:$0xf] %vm703_vm2, %v2682_v16  ;;  %732 = vrot.lane.b32.xlu1 %v2682_v16, %s2414_s21  ;;  %712 = vrot.lane.b32.xlu0 %v2682_v16, %s2415_s20 }
 0x135   : > { %v808_v20 = vpop.f32.mrf.mxu1  ;;  %v1937_v21 = vpop.f32.mrf.mxu0 }
 0x136   : > { %813 = vst.msk [vmem:[#allocation4] sm:$0xf] %vm703_vm2, %v811_v18 }
 0x137   : > { %v1945_v22 = vpop.f32.mrf.mxu1 }
 0x138   : > { %817 = vrot.lane.b32.xlu1 %v811_v18, %s2415_s20  ;;  %722 = vrot.lane.b32.xlu0 %v2682_v16, %s2416_s27 }
 0x13b   : > { %v836_v23 = vld [vmem:[#allocation2] sm:$0xf] }
 0x13c   : > { %827 = vrot.lane.b32.xlu1 %v811_v18, %s2414_s21  ;;  %822 = vrot.lane.b32.xlu0 %v811_v18, %s2416_s27  ;;  %v849_v24 = vsel %vm844_vm3, %v836_v23, 0 }
 0x13d   : > { %1947 = vmatpush3.bf16.xpose.msra.mxu0 %v849_v24  ;;  %v832_v25 = vld [vmem:[#allocation4] sm:$0xf] }
 0x13e   : > { %1958 = vmatprep.subr.bf16.mxu0 %v2412_v0 }
 0x144   : > { %1949 = vmatmul.mubr.msk.bf16.vlgmr.msra.gmra.mxu0 %vm844_vm3, %v832_v25 }
 0x145   : > { %1960 = vmatprep.mubr.msk.bf16.mxu0 %vm2413_vm0, %v2412_v0 }
 0x1a6   : > { %v733_v26 = vpop.permute.xlu1 %732  ;;  %v713_v27 = vpop.permute.xlu0 %712 }
 0x1a7   : > { %736 = vst.msk [vmem:[#allocation2 + $0xc] sm:$0xf] %vm703_vm2, %v733_v26  ;;  %716 = vst.msk [vmem:[#allocation2 + $0x4] sm:$0xf] %vm703_vm2, %v713_v27 }
 0x1aa   : > { %v818_v28 = vpop.permute.xlu1 %817  ;;  %v723_v29 = vpop.permute.xlu0 %722 }
 0x1ab   : > { %821 = vst.msk [vmem:[#allocation4 + $0x4] sm:$0xf] %vm703_vm2, %v818_v28  ;;  %726 = vst.msk [vmem:[#allocation2 + $0x8] sm:$0xf] %vm703_vm2, %v723_v29 }
 0x1ae   : > { %v828_v30 = vpop.permute.xlu1 %827  ;;  %v823_v31 = vpop.permute.xlu0 %822  ;;  %v837_v32 = vld [vmem:[#allocation2 + $0x4] sm:$0xf]  ;;  %v839_v37 = vld [vmem:[#allocation2 + $0xc] sm:$0xf] }
 0x1af   : > { %831 = vst.msk [vmem:[#allocation4 + $0xc] sm:$0xf] %vm703_vm2, %v828_v30  ;;  %826 = vst.msk [vmem:[#allocation4 + $0x8] sm:$0xf] %vm703_vm2, %v823_v31  ;;  %v895_v33 = vsel %vm844_vm3, %v837_v32, 0  ;;  %v987_v38 = vsel %vm844_vm3, %v839_v37, 0 }
 0x1b0   : > { %1953 = vmatpush3.bf16.xpose.msra.mxu1 %v895_v33 }
 0x1b1   : > { %1964 = vmatprep.subr.bf16.mxu1 %v2412_v0 }
 0x1b2   : > { %v838_v34 = vld [vmem:[#allocation2 + $0x8] sm:$0xf]  ;;  %v833_v36 = vld [vmem:[#allocation4 + $0x4] sm:$0xf] }
 0x1b3   : > { %v941_v35 = vsel %vm844_vm3, %v838_v34, 0 }
 0x1b4   : > { %1959 = vmatpush3.bf16.xpose.msra.mxu0 %v941_v35 }
 0x1b5   : > { %1970 = vmatprep.subr.bf16.mxu0 %v2412_v0 }
 0x1b6   : > { %v834_v39 = vld [vmem:[#allocation4 + $0x8] sm:$0xf]  ;;  %v835_v40 = vld [vmem:[#allocation4 + $0xc] sm:$0xf] }
 0x1b7   : > { %1955 = vmatmul.mubr.msk.bf16.vlgmr.msra.gmra.mxu1 %vm844_vm3, %v833_v36  ;;  %v1266_v36 = vld [vmem:[#allocation8] sm:$0xf] }
 0x1b8   : > { %1965 = vmatpush3.bf16.xpose.msra.mxu1 %v987_v38  ;;  %1966 = vmatprep.mubr.msk.bf16.mxu1 %vm2413_vm0, %v2412_v0 }
 0x1b9   : > { %1976 = vmatprep.subr.bf16.mxu1 %v2412_v0 }
 0x1bb   : > { %1961 = vmatmul.mubr.msk.bf16.vlgmr.msra.gmra.mxu0 %vm844_vm3, %v834_v39 }
 0x1bc   : > { %1972 = vmatprep.mubr.msk.bf16.mxu0 %vm2413_vm0, %v2412_v0 }
 0x1bf   : > { %1967 = vmatmul.mubr.msk.bf16.vlgmr.msra.gmra.mxu1 %vm844_vm3, %v835_v40 }
 0x1c0   : > { %1978 = vmatprep.mubr.msk.bf16.mxu1 %vm2413_vm0, %v2412_v0 }
 0x204   : > { %v885_v41 = vpop.f32.mrf.mxu0 }
 0x205   : > { %v1029_v42 = vsel %vm844_vm3, %v885_v41, -inf }
 0x206   : > { %1030 = vmax.xlane.f32.xlu0 %v1029_v42  ;;  %v1950_v43 = vpop.f32.mrf.mxu0  ;;  %v1274_v42 = vsel %vm1080_vm4, %v1266_v36, 0 }
 0x208   : > { %v888_v44 = vpop.f32.mrf.mxu0 }
 0x20a   : > { %v1951_v45 = vpop.f32.mrf.mxu0 }
 0x277   : > { %v931_v46 = vpop.f32.mrf.mxu1 }
 0x278   : > { %v1032_v47 = vsel %vm844_vm3, %v931_v46, -inf }
 0x279   : > { %1033 = vmax.xlane.f32.xlu1 %v1032_v47  ;;  %v1956_v48 = vpop.f32.mrf.mxu1 }
 0x27b   : > { %v934_v49 = vpop.f32.mrf.mxu1  ;;  %v977_v50 = vpop.f32.mrf.mxu0 }
 0x27c   : > { %v1035_v51 = vsel %vm844_vm3, %v977_v50, -inf  ;;  %v1267_v49 = vld [vmem:[#allocation8 + $0x4] sm:$0xf] }
 0x27d   : > { %v1957_v52 = vpop.f32.mrf.mxu1  ;;  %1036 = vmax.xlane.f32.xlu0 %v1035_v51  ;;  %v1962_v53 = vpop.f32.mrf.mxu0  ;;  %v1268_v51 = vld [vmem:[#allocation8 + $0x8] sm:$0xf] }
 0x27f   : > { %v980_v54 = vpop.f32.mrf.mxu0  ;;  %v1023_v55 = vpop.f32.mrf.mxu1 }
 0x280   : > { %v1038_v56 = vsel %vm844_vm3, %v1023_v55, -inf  ;;  %v1366_v54 = vsel %vm1080_vm4, %v1268_v51, 0 }
 0x281   : > { %v1968_v57 = vpop.f32.mrf.mxu1  ;;  %1039 = vmax.xlane.f32.xlu0 %v1038_v56  ;;  %v1963_v58 = vpop.f32.mrf.mxu0 }
 0x283   : > { %v1026_v59 = vpop.f32.mrf.mxu1 }
 0x284   : > { %v1269_v59 = vld [vmem:[#allocation8 + $0xc] sm:$0xf] }
 0x285   : > { %v1969_v60 = vpop.f32.mrf.mxu1 }
 0x28a   : > { %708 = vrot.lane.b32.xlu1 %v2682_v16, %s2417_s26  ;;  %s2900_s26 = sld [smem:[#allocation30_spill]] }
 0x28f   : > { %v1031_v61 = vpop.xlane.xlu0 %1030 }
 0x290   : > { %v1041_v62 = vsub.f32 %v885_v41, %v1031_v61 }
 0x292   : > { %v1045_v63 = vmul.f32 1.442695, %v1041_v62 }
 0x294   : > { %2165 = vpow2.f32 %v1045_v63 }
 0x2a1   : > { %v2166_v1 = vpop.eup %2165 }
 0x2a2   : > { %v1053_v2 = vsel %vm844_vm3, %v2166_v1, 0.0 }
 0x2ae   : > { %1054 = vadd.xlane.f32.xlu1 %v1053_v2 }
 0x302   : > { %v1034_v3 = vpop.xlane.xlu1 %1033 }
 0x303   : > { %v1042_v4 = vsub.f32 %v931_v46, %v1034_v3 }
 0x305   : > { %v1047_v5 = vmul.f32 1.442695, %v1042_v4 }
 0x306   : > { %v709_v7 = vpop.permute.xlu1 %708  ;;  %v1037_v8 = vpop.xlane.xlu0 %1036 }
 0x307   : > { %2167 = vpow2.f32 %v1047_v5  ;;  %711 = vst.msk [vmem:[#allocation3] sm:$0xf] %vm703_vm2, %v709_v7  ;;  %v1043_v9 = vsub.f32 %v977_v50, %v1037_v8  ;;  %v1320_v50 = vsel %vm1080_vm4, %v1267_v49, 0 }
 0x309   : > { %v1049_v10 = vmul.f32 1.442695, %v1043_v9 }
 0x30a   : > { %v1040_v11 = vpop.xlane.xlu0 %1039 }
 0x30b   : > { %2169 = vpow2.f32 %v1049_v10  ;;  %v1044_v12 = vsub.f32 %v1023_v55, %v1040_v11 }
 0x30d   : > { %v1051_v13 = vmul.f32 1.442695, %v1044_v12 }
 0x30e   : > { %v840_v14 = vld [vmem:[#allocation3] sm:$0xf] }
 0x30f   : > { %2171 = vpow2.f32 %v1051_v13  ;;  %v1082_v15 = vsel %vm1080_vm4, %v840_v14, 0 }
 0x310   : > { %1971 = vmatpush3.bf16.msra.mxu0 %v1082_v15 }
 0x311   : > { %1982 = vmatprep.subr.bf16.mxu0 %v2412_v0 }
 0x314   : > { %v2168_v17 = vpop.eup %2167 }
 0x315   : > { %v1056_v18 = vsel %vm844_vm3, %v2168_v17, 0.0 }
 0x316   : > { %1057 = vadd.xlane.f32.xlu0 %v1056_v18 }
 0x318   : > { %v2170_v19 = vpop.eup %2169 }
 0x319   : > { %v1059_v20 = vsel %vm844_vm3, %v2170_v19, 0.0 }
 0x31a   : > { %1060 = vadd.xlane.f32.xlu1 %v1059_v20 }
 0x31c   : > { %v2172_v21 = vpop.eup %2171 }
 0x31d   : > { %v1062_v22 = vsel %vm844_vm3, %v2172_v21, 0.0 }
 0x31e   : > { %1063 = vadd.xlane.f32.xlu0 %v1062_v22 }
 0x32b   : > { %727 = vrot.lane.b32.xlu1 %v2682_v16, %s2418_s15  ;;  %s2901_s15 = smov %s2900_s26 }
 0x32f   : > { %737 = vrot.lane.b32.xlu1 %v2682_v16, %s2419_s19  ;;  %s1696_s19 = scalar_lea.hbm %s2900_s26, %s1887_s6 }
 0x334   : > { %717 = vrot.lane.b32.xlu0 %v2682_v16, %s2420_s23  ;;  %s614_s23 = sand.u32 1, %s2387_s22  }
 0x335   : > { %s1846_s28 = sshll.u32 %s614_s23, 3  ;;  %s1684_s1 = scalar_lea.sflag [#allocation7], %s614_s23 }
 0x336   : > { %s616_s29 = scalar_lea.vmem [#allocation14], %s1846_s28 }
 0x337   : > { %v1055_v23 = vpop.xlane.xlu1 %1054  ;;  %s1698_s21 = sshll.u32 %s616_s29, 4  ;;  %s1699_s21 = int_to_ptr.vmem [resolvable:$true] %s1698_s21 }
 0x338   : > { %2173 = vrcp.f32 %v1055_v23  ;;  %s2315_s30 = scalar_lea.vmem %s1699_s21, 128  ;;  %p2322_p0 = scmp.lt.s32.totalorder %s1699_s21, %s2320_s17 }
 0x339   : > { %p2316_p10 = scmp.ne.s32.totalorder %s1699_s21, %s2315_s30  ;;  %p2323_p5 = scmp.lt.s32.totalorder %s2321_s24, %s2315_s30 }
 0x33b   : > { %p2317_p11 = pnand %p2316_p10, %p2547_p4  ;;  %p2324_p3 = por %p2323_p5, %p2322_p0 }
 0x33d   : > { %p2318_p13 = pneg %p2317_p11 }
 0x33f   : > { %p2325_p6 = pnand %p2324_p3, %p2318_p13 }
 0x345   : > { %v2174_v24 = vpop.eup %2173 }
 0x346   : > { %v1069_v25 = vmul.f32 %v2174_v24, %v2166_v1  ;;  %v1412_v1 = vsel %vm1080_vm4, %v1269_v59, 0  ;;  %v2164_v59 = vld [vmem:[%s2863_s10] sm:$0xff]  }
 0x348   : > { %v1073_v26 = vpack.c.bf16 %v1069_v25, %v1069_v25 }
 0x34a   : > { %1973 = vmatmul.mubr.msk.bf16.vlgmr.msra.gmra.mxu0 %vm844_vm3, %v1073_v26 }
 0x34b   : > { %1984 = vmatprep.mubr.msk.bf16.mxu0 %vm2413_vm0, %v2412_v0 }
 0x39f   : > { %v1058_v27 = vpop.xlane.xlu0 %1057 }
 0x3a0   : > { %2175 = vrcp.f32 %v1058_v27 }
 0x3a3   : > { %v1061_v28 = vpop.xlane.xlu1 %1060 }
 0x3a4   : > { %2177 = vrcp.f32 %v1061_v28 }
 0x3a7   : > { %v728_v29 = vpop.permute.xlu1 %727  ;;  %v1064_v30 = vpop.xlane.xlu0 %1063 }
 0x3a8   : > { %731 = vst.msk [vmem:[#allocation3 + $0x8] sm:$0xf] %vm703_vm2, %v728_v29  ;;  %2179 = vrcp.f32 %v1064_v30 }
 0x3ab   : > { %v738_v16 = vpop.permute.xlu1 %737  ;;  %v718_v31 = vpop.permute.xlu0 %717 }
 0x3ac   : > { %741 = vst.msk [vmem:[#allocation3 + $0xc] sm:$0xf] %vm703_vm2, %v738_v16  ;;  %721 = vst.msk [vmem:[#allocation3 + $0x4] sm:$0xf] %vm703_vm2, %v718_v31 }
 0x3ad   : > { %v2176_v32 = vpop.eup %2175 }
 0x3ae   : > { %v1070_v38 = vmul.f32 %v2176_v32, %v2168_v17  ;;  %v1871_v32 = vld [vmem:[#allocation10] ss:$0 sm:$0xff] }
 0x3af   : > { %v842_v33 = vld [vmem:[#allocation3 + $0x8] sm:$0xf] }
 0x3b0   : > { %v1174_v34 = vsel %vm1080_vm4, %v842_v33, 0  ;;  %v1074_v44 = vpack.c.bf16 %v1070_v38, %v1070_v38 }
 0x3b1   : > { %v2178_v35 = vpop.eup %2177  ;;  %1983 = vmatpush3.bf16.msra.mxu0 %v1174_v34 }
 0x3b2   : > { %v1071_v37 = vmul.f32 %v2178_v35, %v2170_v19  ;;  %1994 = vmatprep.subr.bf16.mxu0 %v2412_v0 }
 0x3b3   : > { %v841_v39 = vld [vmem:[#allocation3 + $0x4] sm:$0xf]  ;;  %v843_v43 = vld [vmem:[#allocation3 + $0xc] sm:$0xf] }
 0x3b4   : > { %v1128_v40 = vsel %vm1080_vm4, %v841_v39, 0  ;;  %v1075_v41 = vpack.c.bf16 %v1071_v37, %v1071_v37  ;;  %v1220_v46 = vsel %vm1080_vm4, %v843_v43, 0 }
 0x3b5   : > { %1977 = vmatpush3.bf16.msra.mxu1 %v1128_v40  ;;  %v2180_v45 = vpop.eup %2179 }
 0x3b6   : > { %1985 = vmatmul.mubr.msk.bf16.vlgmr.msra.gmra.mxu0 %vm844_vm3, %v1075_v41  ;;  %1988 = vmatprep.subr.bf16.mxu1 %v2412_v0  ;;  %v1072_v47 = vmul.f32 %v2180_v45, %v2172_v21  ;;  %v2159_v45 = vld [vmem:[#allocation11 + $0x8] sm:$0xff]  }
 0x3b7   : > { %1995 = vmatpush3.bf16.msra.mxu0 %v1274_v42  ;;  %1996 = vmatprep.mubr.msk.bf16.mxu0 %vm2413_vm0, %v2412_v0 }
 0x3b8   : > { %1979 = vmatmul.mubr.msk.bf16.vlgmr.msra.gmra.mxu1 %vm844_vm3, %v1074_v44  ;;  %2006 = vmatprep.subr.bf16.mxu0 %v2412_v0  ;;  %v1076_v48 = vpack.c.bf16 %v1072_v47, %v1072_v47  ;;  %v2162_v47 = vld [vmem:[%s2863_s10 + $0x10] sm:$0xff]  }
 0x3b9   : > { %1989 = vmatpush3.bf16.msra.mxu1 %v1220_v46  ;;  %1990 = vmatprep.mubr.msk.bf16.mxu1 %vm2413_vm0, %v2412_v0  ;;  %v2160_v46 = vld [vmem:[#allocation11] sm:$0xff]  }
 0x3ba   : > { %2000 = vmatprep.subr.bf16.mxu1 %v2412_v0 }
 0x3c0   : > { %1991 = vmatmul.mubr.msk.bf16.vlgmr.msra.gmra.mxu1 %vm844_vm3, %v1076_v48 }
 0x3c1   : > { %2002 = vmatprep.mubr.msk.bf16.mxu1 %vm2413_vm0, %v2412_v0  ;;  %2001 = vmatpush3.bf16.msra.mxu1 %v1320_v50 }
 0x3c2   : > { %2012 = vmatprep.subr.bf16.mxu1 %v2412_v0 }
 0x40a   : > { %v1118_v52 = vpop.f32.mrf.mxu0 }
 0x40b   : > { %v1262_v53 = vpack.c.bf16 %v1118_v52, %v1118_v52  ;;  %v1872_v52 = vld [vmem:[%s2865_s12] ss:$0 sm:$0xff] }
 0x40c   : > { %v1974_v55 = vpop.f32.mrf.mxu0 }
 0x40d   : > { %1997 = vmatmul.mubr.msk.bf16.vlgmr.msra.gmra.mxu0 %vm844_vm3, %v1262_v53 }
 0x40e   : > { %v1121_v56 = vpop.f32.mrf.mxu0  ;;  %2007 = vmatpush3.bf16.msra.mxu0 %v1366_v54  ;;  %2008 = vmatprep.mubr.msk.bf16.mxu0 %vm2413_vm0, %v2412_v0  ;;  %v1873_v54 = vld [vmem:[%s2866_s13] ss:$0 sm:$0xff] }
 0x40f   : > { %2018 = vmatprep.subr.bf16.mxu0 %v2412_v0 }
 0x410   : > { %v1975_v57 = vpop.f32.mrf.mxu0 }
 0x476   : > { %v1210_v58 = vpop.f32.mrf.mxu0 }
 0x477   : > { %v1264_v60 = vpack.c.bf16 %v1210_v58, %v1210_v58  ;;  %v2163_v58 = vld [vmem:[%s2863_s10 + $0x8] sm:$0xff]  }
 0x478   : > { %v1164_v61 = vpop.f32.mrf.mxu1  ;;  %v1986_v62 = vpop.f32.mrf.mxu0 }
 0x479   : > { %v1263_v63 = vpack.c.bf16 %v1164_v61, %v1164_v61  ;;  %2009 = vmatmul.mubr.msk.bf16.vlgmr.msra.gmra.mxu0 %vm844_vm3, %v1264_v60  ;;  %v1874_v60 = vld [vmem:[#allocation13] ss:$0 sm:$0xff] }
 0x47a   : > { %v1980_v2 = vpop.f32.mrf.mxu1  ;;  %v1213_v3 = vpop.f32.mrf.mxu0  ;;  %2022 = vmatprep.mubr.msk.bf16.mxu0 %vm2413_vm0, %v2412_v0  ;;  %2019 = vmatpush3.bf16.msra.mxu0 %v2159_v45 }
 0x47b   : > { %2003 = vmatmul.mubr.msk.bf16.vlgmr.msra.gmra.mxu1 %vm844_vm3, %v1263_v63  ;;  %2020 = vmatprep.subr.bf16.mxu0 %v2412_v0 }
 0x47c   : > { %v1167_v4 = vpop.f32.mrf.mxu1  ;;  %v1987_v5 = vpop.f32.mrf.mxu0  ;;  %2013 = vmatpush3.bf16.msra.mxu1 %v1412_v1  ;;  %2014 = vmatprep.mubr.msk.bf16.mxu1 %vm2413_vm0, %v2412_v0 }
 0x47d   : > { %2026 = vmatprep.subr.bf16.mxu1 %v2412_v0  ;;  %v1878_v5 = vld [vmem:[%s2864_s11] ss:$0 sm:$0xff] }
 0x47e   : > { %v1981_v7 = vpop.f32.mrf.mxu1  ;;  %2021 = vmatpush3.bf16.msra.mxu0 %v2160_v46 }
 0x480   : > { %v1256_v8 = vpop.f32.mrf.mxu1 }
 0x481   : > { %v1265_v9 = vpack.c.bf16 %v1256_v8, %v1256_v8 }
 0x482   : > { %v1992_v10 = vpop.f32.mrf.mxu1 }
 0x483   : > { %2015 = vmatmul.mubr.msk.bf16.vlgmr.msra.gmra.mxu1 %vm844_vm3, %v1265_v9 }
 0x484   : > { %v1259_v11 = vpop.f32.mrf.mxu1  ;;  %2034 = vmatprep.mubr.msk.bf16.mxu1 %vm2413_vm0, %v2412_v0 }
 0x486   : > { %v1993_v12 = vpop.f32.mrf.mxu1 }
 0x4cd   : > { %v1310_v13 = vpop.f32.mrf.mxu0 }
 0x4ce   : > { %v1454_v24 = vsel %vm658_vm1, %v1310_v13, 0.0 }
 0x4cf   : > { %v1998_v14 = vpop.f32.mrf.mxu0 }
 0x4d1   : > { %v1313_v15 = vpop.f32.mrf.mxu0 }
 0x4d3   : > { %v1999_v17 = vpop.f32.mrf.mxu0 }
 0x539   : > { %v1402_v18 = vpop.f32.mrf.mxu0 }
 0x53a   : > { %v1457_v29 = vsel %vm658_vm1, %v1402_v18, 0.0 }
 0x53b   : > { %v1356_v19 = vpop.f32.mrf.mxu1  ;;  %v2010_v20 = vpop.f32.mrf.mxu0 }
 0x53c   : > { %v1455_v21 = vsel %vm658_vm1, %v1356_v19, 0.0 }
 0x53d   : > { %v2004_v22 = vpop.f32.mrf.mxu1  ;;  %v1405_v23 = vpop.f32.mrf.mxu0  ;;  %v1456_v25 = vadd.f32 %v1455_v21, %v1454_v24 }
 0x53e   : > { %v1884_v23 = vld [vmem:[%s2867_s14] ss:$0 sm:$0xff] }
 0x53f   : > { %v1359_v26 = vpop.f32.mrf.mxu1  ;;  %v2011_v27 = vpop.f32.mrf.mxu0  ;;  %v1458_v16 = vadd.f32 %v1457_v29, %v1456_v25  ;;  %v1885_v25 = vld [vmem:[%s2899_s25] ss:$0 sm:$0xff] }
 0x541   : > { %v2005_v28 = vpop.f32.mrf.mxu1 }
 0x543   : > { %v1448_v30 = vpop.f32.mrf.mxu1 }
 0x544   : > { %v1459_v31 = vsel %vm658_vm1, %v1448_v30, 0.0 }
 0x545   : > { %v1460_v33 = vadd.f32 %v1459_v31, %v1458_v16  ;;  %v2016_v34 = vpop.f32.mrf.mxu1 }
 0x547   : > { %v1468_v35 = vadd.f32 %v1871_v32, %v1460_v33  ;;  %v1451_v36 = vpop.f32.mrf.mxu1 }
 0x549   : > { %v2017_v37 = vpop.f32.mrf.mxu1  ;;  %v1469_v38 = vadd.f32 %v1468_v35, %v2664_v6  ;;  %v2161_v6 = vld [vmem:[%s2863_s10 + $0x18] sm:$0xff]  }
 0x54a   : > { %2027 = vmatpush3.bf16.msra.mxu1 %v2161_v6 }
 0x54b   : > { %v1472_v39 = vsel %vm658_vm1, %v1469_v38, 0.0  ;;  %2028 = vmatprep.subr.bf16.mxu1 %v2412_v0 }
 0x54c   : > { %1473 = vadd.xlane.f32.xlu0 %v1472_v39 }
 0x54e   : > { %2029 = vmatpush3.bf16.msra.mxu1 %v2162_v47 }
 0x54f   : > { %2030 = vmatprep.subr.bf16.mxu1 %v2412_v0 }
 0x552   : > { %2031 = vmatpush3.bf16.msra.mxu1 %v2163_v58 }
 0x553   : > { %2032 = vmatprep.subr.bf16.mxu1 %v2412_v0 }
 0x556   : > { %2033 = vmatpush3.bf16.msra.mxu1 %v2164_v59 }
 0x5d5   : > { %v1474_v40 = vpop.xlane.xlu0 %1473 }
 0x5d6   : > { %v1476_v41 = vmul.f32 0.03125, %v1474_v40 }
 0x5d8   : > { %v1477_v42 = vsub.f32 %v1469_v38, %v1476_v41 }
 0x5da   : > { %v1478_v43 = vmul.f32 %v1477_v42, %v1477_v42 }
 0x5dc   : > { %v1479_v44 = vsel %vm658_vm1, %v1478_v43, 0.0 }
 0x5dd   : > { %1480 = vadd.xlane.f32.xlu1 %v1479_v44 }
 0x666   : > { %v1481_v48 = vpop.xlane.xlu1 %1480 }
 0x667   : > { %v1482_v49 = vmul.f32 0.03125, %v1481_v48 }
 0x669   : > { %v1483_v50 = vadd.f32 1e-05, %v1482_v49 }
 0x66b   : > { %2181 = vrsqrt.f32 %v1483_v50 }
 0x678   : > { %v2182_v51 = vpop.eup %2181 }
 0x679   : > { %v1485_v53 = vmul.f32 %v2182_v51, %v1477_v42 }
 0x67b   : > { %v1492_v55 = vmul.f32 %v1872_v52, %v1485_v53 }
 0x67d   : > { %v1499_v56 = vadd.f32 %v1873_v54, %v1492_v55 }
 0x67f   : > { %v1500_v57 = vpack.c.bf16 %v1499_v56, %v1499_v56 }
 0x681   : > { %2023 = vmatmul.mubr.msk.bf16.vlgmr.msra.gmra.mxu0 %vm658_vm1, %v1500_v57 }
 0x741   : > { %v1561_v61 = vpop.f32.mrf.mxu0 }
 0x742   : > { %v1562_v62 = vadd.f32 %v1874_v60, %v1561_v61 }
 0x743   : > { %v2024_v63 = vpop.f32.mrf.mxu0 }
 0x744   : > { %v1567_v1 = vmax.f32 %v1562_v62, 0.0 }
 0x745   : > { %v1564_v2 = vpop.f32.mrf.mxu0 }
 0x746   : > { %v1568_v3 = vpack.c.bf16 %v1567_v1, %v1567_v1 }
 0x747   : > { %v2025_v4 = vpop.f32.mrf.mxu0 }
 0x748   : > { %2035 = vmatmul.mubr.msk.bf16.vlgmr.msra.gmra.mxu1 %vm1608_vm5, %v1568_v3 }
 0x808   : > { %v1646_v0 = vpop.f32.mrf.mxu1 }
 0x809   : > { %v1647_v7 = vadd.f32 %v1878_v5, %v1646_v0 }
 0x80a   : > { %v2036_v8 = vpop.f32.mrf.mxu1 }
 0x80b   : > { %v1652_v9 = vadd.f32 %v1647_v7, %v1499_v56 }
 0x80c   : > { %v1649_v10 = vpop.f32.mrf.mxu1 }
 0x80d   : > { %v1655_v11 = vsel %vm658_vm1, %v1652_v9, 0.0 }
 0x80e   : > { %1656 = vadd.xlane.f32.xlu0 %v1655_v11  ;;  %v2037_v12 = vpop.f32.mrf.mxu1 }
 0x897   : > { %v1657_v13 = vpop.xlane.xlu0 %1656 }
 0x898   : > { %v1658_v14 = vmul.f32 0.03125, %v1657_v13 }
 0x89a   : > { %v1659_v15 = vsub.f32 %v1652_v9, %v1658_v14 }
 0x89c   : > { %v1660_v17 = vmul.f32 %v1659_v15, %v1659_v15 }
 0x89e   : > { %v1661_v18 = vsel %vm658_vm1, %v1660_v17, 0.0 }
 0x89f   : > { %1662 = vadd.xlane.f32.xlu0 %v1661_v18 }
 0x928   : > { %v1663_v19 = vpop.xlane.xlu0 %1662 }
 0x929   : > { %v1664_v20 = vmul.f32 0.03125, %v1663_v19 }
 0x92b   : > { %v1665_v21 = vadd.f32 1e-05, %v1664_v20 }
 0x92d   : > { %2183 = vrsqrt.f32 %v1665_v21 }
 0x93a   : > { %v2184_v22 = vpop.eup %2183 }
 0x93b   : > { %v1667_v24 = vmul.f32 %v2184_v22, %v1659_v15 }
 0x93d   : > { %v1674_v26 = vmul.f32 %v1884_v23, %v1667_v24 }
 0x93f   : > { %v1681_v27 = vadd.f32 %v1885_v25, %v1674_v26 }
 0x941   : > { %1682 = vst.msk [vmem:[%s616_s29] sm:$0xff] %vm658_vm1, %v1681_v27 }
 0x942   : > { %2328 = shalt.err (!%p2325_p6)
}
 0x943   : > { %s2329_s28 = scalar_lea.hbm %s1696_s19, 128  ;;  %s2333_s25 = scalar_lea.hbm %s2901_s15, 256 }
 0x944   : > { %p2330_p7 = scmp.ne.s32.totalorder %s1696_s19, %s2329_s28  ;;  %p2334_p12 = scmp.lt.s32.totalorder %s1696_s19, %s2901_s15 }
 0x945   : > { %p2335_p1 = scmp.lt.s32.totalorder %s2333_s25, %s2329_s28 }
 0x946   : > { %p2331_p9 = pnand %p2330_p7, %p2547_p4 }
 0x947   : > { %p2336_p8 = por %p2335_p1, %p2334_p12 }
 0x948   : > { %p2332_p2 = pneg %p2331_p9 }
 0x94a   : > { %p2337_p10 = pnand %p2336_p8, %p2332_p2 }
 0x94c   : > { %2340 = shalt.err (!%p2337_p10)
}
 0x94d   : > { %2058 = dma.vmem_to_hbm [thread:$0]  (%p2547_p4), %s1699_s21, 128, %s1696_s19, %s1684_s1  }
 0x94e PF: > { %s2902_s20 = sld [smem:[#allocation22_spill]] }
 0x94f   : > { %s2903_s27 = sld [smem:[#allocation19_spill]] }
 0x950   : > { %s2904_s26 = sld [smem:[#allocation24_spill]] }
 0x954   : > { %p2090_p11 = scmp.ge.s32.totalorder %s2902_s20, 2 }
 0x955   : > { %s1710_s30 = sand.u32 1, %s2903_s27  }
 0x956   : > { %p2905_p13 = scmp.ne.s32.totalorder %s2904_s26, 0  ;;  %s1711_s18 = scalar_lea.sflag [#allocation7], %s1710_s30 }
 0x958   : > { %p2077_p0 = pnand %p2090_p11, %p2905_p13 }
 0x95a   : > { %p2078_p5 = pneg %p2077_p0 }
 0x95c   : > { %2378 = dma.done.wait (%p2078_p5), %s1711_s18, 128  }
 0x95d   : > { %2380 = vsyncadd (%p2078_p5), %s1711_s18, 4294967168  ;;  %s32_s26 = sadd.s32 1, %s2902_s20   ;;  %s2906_s17 = sld [smem:[#allocation20_spill]] }
 0x95e   : > { %p29_p3 = scmp.ge.s32.totalorder %s32_s26, 4   ;;  %s2907_s23 = sld [smem:[#allocation25_spill]] }
 0x95f   : > { %s2908_s24 = sld [smem:[#allocation21_spill]]  ;;  %s2910_s21 = smov %s2387_s22 }
 0x960   : > { %s2909_s25 = sld [smem:[#allocation23_spill]]  ;;  %31 = sbr.rel (!%p29_p3) target bundleno = 13 (0xd), region = 156 }
 0x963   : > { %s2911_s22 = smov %s2906_s17 }
 0x965   :  { %1716 = vsyncpa [#allocation6], 1 }
 0x966   :  { %1718 = vsyncpa [#allocation6 + $0x1], 1 }
 0x967   :  { %1719 = vsyncpa [#allocation9], 1 }
 0x968   :  { %1720 = vsyncpa [#allocation12], 1 }
 0x969   :  { %1721 = vsyncpa [#allocation7], 1 }
 0x96a   :  { %1723 = vsyncpa [#allocation7 + $0x1], 1 }

// kernel: tpu_custom_call.1
= control target key start
LH: loop header
LB: loop body
LE: loop exit
PB: predicated region body
PF: predicated region fallthrough
CT: control target
= control target key end

     0   :  { %s2853_s0 = inlined_call_operand.vmem [shape: f32[2,8,32], index: 0, kind: input, shape index: {}]   ;;  %s2854_s1 = inlined_call_operand.vmem [shape: f32[2,8,32], index: 1, kind: input, shape index: {}]   ;;  %s2855_s2 = inlined_call_operand.vmem [shape: bf16[32,32], index: 2, kind: input, shape index: {}]   ;;  %s2856_s3 = inlined_call_operand.vmem [shape: f32[1,32], index: 3, kind: input, shape index: {}]   ;;  %s2857_s4 = inlined_call_operand.hbm [shape: bf16[32,64], index: 4, kind: input, shape index: {}]   ;;  %s2858_s5 = inlined_call_operand.vmem [shape: f32[1,64], index: 5, kind: input, shape index: {}]   ;;  %s2859_s6 = inlined_call_operand.hbm [shape: bf16[4,8,32], index: 6, kind: input, shape index: {}]   ;;  %s2860_s7 = inlined_call_operand.hbm [shape: f32[1,32], index: 7, kind: input, shape index: {}]   ;;  %s2861_s8 = inlined_call_operand.hbm [shape: bf16[32,64], index: 8, kind: input, shape index: {}]   ;;  %s2862_s9 = inlined_call_operand.hbm [shape: f32[1,64], index: 9, kind: input, shape index: {}]   ;;  %s2863_s10 = inlined_call_operand.vmem [shape: bf16[64,32], index: 10, kind: input, shape index: {}]   ;;  %s2864_s11 = inlined_call_operand.vmem [shape: f32[1,32], index: 11, kind: input, shape index: {}]   ;;  %s2865_s12 = inlined_call_operand.vmem [shape: f32[1,32], index: 12, kind: input, shape index: {}]   ;;  %s2866_s13 = inlined_call_operand.vmem [shape: f32[1,32], index: 13, kind: input, shape index: {}]   ;;  %s2867_s14 = inlined_call_operand.vmem [shape: f32[1,32], index: 14, kind: input, shape index: {}]   ;;  %s2868_s15 = inlined_call_operand.vmem [shape: f32[1,32], index: 15, kind: input, shape index: {}]   ;;  %s2869_s16 = inlined_call_operand.hbm [shape: f32[2,8,32], index: 16, kind: output, shape index: {}]  }
   0x1   :  { %2878 = sst [smem:[#allocation26_spill]] %s2853_s0 }
   0x2   :  { %2879 = sst [smem:[#allocation27_spill]] %s2854_s1 }
   0x3   :  { %2880 = sst [smem:[#allocation28_spill]] %s2859_s6 }
   0x4   :  { %2881 = sst [smem:[#allocation29_spill]] %s2868_s15 }
   0x5   :  { %2882 = sst [smem:[#allocation30_spill]] %s2869_s16 }
   0x6   :  { %21 = vsyncpa [#allocation6], 0 }
   0x7   :  { %22 = vsyncpa [#allocation9], 0 }
   0x8   :  { %23 = vsyncpa [#allocation12], 0 }
   0x9   :  { %24 = vsyncpa [#allocation7], 0 }
   0xa   :  { %26 = vsyncpa [#allocation7 + $0x1], 0  ;;  %s2507_s21 = smov 0   ;;  %s2509_s22 = smov 0  }
   0xb   :  { %s2511_s23 = smov 0   ;;  %s2513_s24 = smov 0  }
   0xc   :  { %s2515_s25 = smov 0   ;;  %s2517_s26 = smov 0  }
   0xd LB: > { %2883 = sst [smem:[#allocation19_spill]] %s2383_s21  ;;  %s1831_s27 = sadd.s32 4294967295, %s2403_s26   ;;  %s2403_s26 = sphi %s2517_s26, %s32_s26   ;;  %s2399_s25 = sphi %s2515_s25, %s2909_s25   ;;  %s2395_s24 = sphi %s2513_s24, %s2908_s24   ;;  %s2391_s23 = sphi %s2511_s23, %s2907_s23   ;;  %s2387_s22 = sphi %s2509_s22, %s2911_s22   ;;  %s2383_s21 = sphi %s2507_s21, %s2910_s21  }
   0xe   : > { %2884 = sst [smem:[#allocation20_spill]] %s2391_s23  ;;  %s1832_s28 = sadd.s32 4294967294, %s2403_s26  }
   0xf   : > { %2885 = sst [smem:[#allocation21_spill]] %s2399_s25  ;;  %s44_s29 = sadd.s32 1, %s2399_s25 }
  0x10   : > { %2886 = sst [smem:[#allocation22_spill]] %s2403_s26  ;;  %s401_s30 = sadd.s32 1, %s2391_s23 }
  0x11   : > { %p46_p0 = scmp.ge.s32.totalorder %s44_s29, 2  ;;  %p411_p1 = scmp.ne.s32.totalorder %s2391_s23, %s2387_s22 }
  0x12   : > { %p412_p2 = scmp.eq.s32.totalorder %s1831_s27, 1  ;;  %p417_p3 = scmp.ne.s32.totalorder %s2387_s22, %s2383_s21 }
  0x13   : > { %s2913_s29 = smov (%p46_p0, %s44_s29), 0  ;;  %p418_p5 = scmp.eq.s32.totalorder %s1832_s28, 1 }
  0x14   : > { %2887 = sst [smem:[#allocation23_spill]] %s2913_s29  ;;  %p2547_p4 = por %p412_p2, %p411_p1 }
  0x15   : > { %s396_s17 = ssub.s32 %s2399_s25, %s2913_s29  ;;  %p1833_p6 = scmp.ge.s32.totalorder %s2403_s26, 1 }
  0x16   : > { %p399_p7 = scmp.eq.s32.totalorder %s396_s17, 0  ;;  %p2554_p8 = por %p418_p5, %p417_p3 }
  0x17   : > { %p425_p9 = scmp.lt.s32.totalorder %s2403_s26, 3  ;;  %p2566_p11 = scmp.eq.s32.totalorder %s1831_s27, 0 }
  0x18   : > { %s2889_s18 = scalar_select %p2554_p8, 1, 0 }
  0x19   : > { %s2560_s19 = scalar_select %p399_p7, %s2391_s23, %s401_s30  }
  0x1a   : > { %2890 = sst [smem:[#allocation24_spill]] %s2889_s18  ;;  %p2562_p10 = pnand %p1833_p6, %p425_p9 }
  0x1b   : > { %2891 = sst [smem:[#allocation25_spill]] %s2560_s19  ;;  %s2405_s28 = smov [#allocation8]  }
  0x1c   : > { %p2060_p12 = pneg %p2562_p10  ;;  %s459_s17 = sshll.u32 %s2405_s28, 4  ;;  %s460_s17 = int_to_ptr.vmem [resolvable:$true] %s459_s17 }
  0x1d   : > { %s2406_s30 = smov [#allocation11]   ;;  %s2196_s19 = scalar_lea.vmem %s460_s17, 256 }
  0x1e   : > { %p2574_p13 = pnand %p2566_p11, %p2060_p12  ;;  %s483_s25 = sshll.u32 %s2406_s30, 4  ;;  %s484_s25 = int_to_ptr.vmem [resolvable:$true] %s483_s25 }
  0x1f   : > { %p2197_p1 = scmp.ne.s32.totalorder %s460_s17, %s2196_s19  ;;  %p2204_p5 = scmp.lt.s32.totalorder %s460_s17, %s460_s17 }
  0x20   : > { %p2580_p0 = pneg %p2574_p13  ;;  %p2205_p6 = scmp.lt.s32.totalorder %s2196_s19, %s2196_s19 }
  0x22   : > { %p2199_p2 = pnand %p2197_p1, %p2580_p0  ;;  %p2206_p7 = por %p2205_p6, %p2204_p5 }
  0x24   : > { %p2200_p3 = pneg %p2199_p2 }
  0x26   : > { %p2207_p9 = pnand %p2206_p7, %p2200_p3 }
  0x28   : > { %2210 = shalt.err (!%p2207_p9)
}
  0x29   : > { %s2407_s28 = smov 64   ;;  %s2408_s30 = smov 4  }
  0x2a   : > { %s2896_s6 = sld [smem:[#allocation28_spill]]  ;;  %s2222_s26 = scalar_lea.vmem %s484_s25, 256 }
  0x2b   : > { %p2223_p12 = scmp.ne.s32.totalorder %s484_s25, %s2222_s26  ;;  %p2230_p5 = scmp.lt.s32.totalorder %s484_s25, %s484_s25 }
  0x2c   : > { %p2231_p3 = scmp.lt.s32.totalorder %s2222_s26, %s2222_s26 }
  0x2d   : > { %p2225_p1 = pnand %p2223_p12, %p2580_p0 }
  0x2e   : > { %p2232_p6 = por %p2231_p3, %p2230_p5 }
  0x2f   : > { %p2226_p2 = pneg %p2225_p1 }
  0x30   : > { %2066 = dma.hbm_to_vmem [thread:$0]  (!%p2574_p13), %s2896_s6, 256, %s460_s17, [#allocation9], %s2407_s28, %s2407_s28, %s2408_s30  }
  0x31   : > { %p2233_p7 = pnand %p2232_p6, %p2226_p2 }
  0x33   : > { %2236 = shalt.err (!%p2233_p7)
}
  0x34   : > { %2072 = dma.hbm_to_vmem [thread:$0]  (!%p2574_p13), %s2861_s8, 256, %s484_s25, [#allocation12], %s2407_s28, %s2407_s28, %s2408_s30  }
  0x35   : > { %s2409_s23 = smov [#allocation5]   ;;  %s2410_s17 = smov [#allocation10]  }
  0x36   : > { %s443_s18 = sshll.u32 %s2409_s23, 4  ;;  %s473_s6 = sshll.u32 %s2410_s17, 4  ;;  %s444_s18 = int_to_ptr.vmem [resolvable:$true] %s443_s18  ;;  %s474_s6 = int_to_ptr.vmem [resolvable:$true] %s473_s6 }
  0x37   : > { %s2248_s15 = scalar_lea.vmem %s444_s18, 256  ;;  %p2256_p2 = scmp.lt.s32.totalorder %s444_s18, %s444_s18 }
  0x38   : > { %p2249_p9 = scmp.ne.s32.totalorder %s444_s18, %s2248_s15  ;;  %p2257_p5 = scmp.lt.s32.totalorder %s2248_s15, %s2248_s15 }
  0x3a   : > { %p2251_p12 = pnand %p2249_p9, %p2580_p0  ;;  %p2258_p3 = por %p2257_p5, %p2256_p2 }
  0x3c   : > { %p2252_p1 = pneg %p2251_p12 }
  0x3e   : > { %p2259_p6 = pnand %p2258_p3, %p2252_p1 }
  0x40   : > { %2262 = shalt.err (!%p2259_p6)
}
  0x41   : > { %2063 = dma.hbm_to_vmem [thread:$0]  (!%p2574_p13), %s2857_s4, 256, %s444_s18, [#allocation6], %s2407_s28, %s2407_s28, %s2408_s30  }
  0x42   : > { %s2274_s26 = scalar_lea.vmem %s474_s6, 16  ;;  %s2281_s15 = scalar_lea.vmem %s474_s6, 32 }
  0x43   : > { %p2275_p7 = scmp.ne.s32.totalorder %s474_s6, %s2274_s26  ;;  %p2282_p2 = scmp.lt.s32.totalorder %s474_s6, %s474_s6 }
  0x44   : > { %p2283_p1 = scmp.lt.s32.totalorder %s2281_s15, %s2274_s26 }
  0x45   : > { %p2277_p9 = pnand %p2275_p7, %p2580_p0 }
  0x46   : > { %p2284_p5 = por %p2283_p1, %p2282_p2 }
  0x47   : > { %p2278_p12 = pneg %p2277_p9 }
  0x49   : > { %p2285_p3 = pnand %p2284_p5, %p2278_p12 }
  0x4b   : > { %2288 = shalt.err (!%p2285_p3)
}
  0x4c   : > { %2069 = dma.hbm_to_vmem [thread:$0]  (!%p2574_p13), %s2860_s7, 16, %s474_s6, [#allocation9]  }
  0x4d   : > { %s2411_s28 = smov [#allocation13]  }
  0x4e   : > { %s497_s30 = sshll.u32 %s2411_s28, 4  ;;  %s498_s30 = int_to_ptr.vmem [resolvable:$true] %s497_s30 }
  0x4f   : > { %s2300_s18 = scalar_lea.vmem %s498_s30, 16  ;;  %s2307_s17 = scalar_lea.vmem %s498_s30, 32 }
  0x50   : > { %p2301_p6 = scmp.ne.s32.totalorder %s498_s30, %s2300_s18  ;;  %p2308_p8 = scmp.lt.s32.totalorder %s498_s30, %s498_s30 }
  0x51   : > { %p2309_p2 = scmp.lt.s32.totalorder %s2307_s17, %s2300_s18 }
  0x52   : > { %p2303_p7 = pnand %p2301_p6, %p2580_p0 }
  0x53   : > { %p2310_p12 = por %p2309_p2, %p2308_p8 }
  0x54   : > { %p2304_p9 = pneg %p2303_p7 }
  0x56   : > { %p2311_p1 = pnand %p2310_p12, %p2304_p9 }
  0x58   : > { %2314 = shalt.err (!%p2311_p1)
}
  0x59   : > { %2075 = dma.hbm_to_vmem [thread:$0]  (!%p2574_p13), %s2862_s9, 16, %s498_s30, [#allocation12]  }
  0x5a   : > { %545 = sbr.rel (%p2562_p10) target bundleno = 2382 (0x94e), region = 84 }
  0x5f   : > { %2366 = dma.done.wait (%p2566_p11), [#allocation6], 256  }
  0x60   : > { %2368 = vsyncadd (%p2566_p11), [#allocation6], 4294967040 }
  0x61   : > { %2370 = dma.done.wait (%p2566_p11), [#allocation9], 272  }
  0x62   : > { %2372 = vsyncadd (%p2566_p11), [#allocation9], 4294967024 }
  0x63   : > { %2374 = dma.done.wait (%p2566_p11), [#allocation12], 272  }
  0x64   : > { %2376 = vsyncadd (%p2566_p11), [#allocation12], 4294967024  ;;  %p617_p8 = scmp.lt.s32.totalorder %s2395_s24, 1  ;;  %v2412_v0 = vmov 0.0   ;;  %vm2413_vm0 = vmmov 0   ;;  %v2155_v1 = vld [vmem:[#allocation5 + $0x8] sm:$0xff]  }
  0x65   : > { %1930 = vmatprep.subr.bf16.mxu0 %v2412_v0  ;;  %1938 = vmatprep.subr.bf16.mxu1 %v2412_v0  ;;  %v2156_v2 = vld [vmem:[%s2855_s2 + $0x8] sm:$0xff]   ;;  %s2897_s1 = sld [smem:[#allocation27_spill]]  ;;  %v2157_v3 = vld [vmem:[#allocation5] sm:$0xff]   ;;  %v2158_v4 = vld [vmem:[%s2855_s2] sm:$0xff]   ;;  %vm658_vm1 = vcmask 261120   ;;  %vm703_vm2 = vcmask 60416  }
  0x66   : > { %1934 = vmatprep.mubr.msk.bf16.mxu0 %vm2413_vm0, %v2412_v0  ;;  %s618_s6 = scalar_select %p617_p8, %s2395_s24, 1  ;;  %1942 = vmatprep.mubr.msk.bf16.mxu1 %vm2413_vm0, %v2412_v0  ;;  %v1849_v9 = vld [vmem:[%s2858_s5] ss:$0 sm:$0xff]  ;;  %vm844_vm3 = vcmask 64512   ;;  %vm1080_vm4 = vcmask 1043456   ;;  %vm1608_vm5 = vcmask 523264  }
  0x67   : > { %s2898_s28 = sld [smem:[#allocation26_spill]]  ;;  %1931 = vmatpush3.bf16.msra.mxu0 %v2155_v1  ;;  %1939 = vmatpush3.bf16.msra.mxu1 %v2156_v2  ;;  %v1854_v10 = vld [vmem:[%s2856_s3] ss:$0 sm:$0xff]  ;;  %s2414_s21 = smov 104  }
  0x68   : > { %s1847_s29 = sshll.u32 %s618_s6, 3  ;;  %1932 = vmatprep.subr.bf16.mxu0 %v2412_v0  ;;  %1940 = vmatprep.subr.bf16.mxu1 %v2412_v0  ;;  %s2415_s20 = smov 120  }
  0x69   : > { %s2416_s27 = smov 112   ;;  %s2417_s26 = smov 96  }
  0x6a   : > { %s2419_s19 = smov 72   ;;  %s2420_s23 = smov 88  }
  0x6b   : > { %s627_s15 = scalar_lea.vmem %s2897_s1, %s1847_s29  ;;  %1933 = vmatpush3.bf16.msra.mxu0 %v2157_v3  ;;  %1941 = vmatpush3.bf16.msra.mxu1 %v2158_v4  ;;  %s2899_s25 = sld [smem:[#allocation29_spill]] }
  0x6c   : > { %v633_v5 = vld [vmem:[%s627_s15] sm:$0xff]  ;;  %1946 = vmatprep.subr.bf16.mxu0 %v2412_v0  ;;  %1952 = vmatprep.subr.bf16.mxu1 %v2412_v0  ;;  %s2418_s15 = smov 80   ;;  %s1887_s6 = sshll.u32 %s2395_s24, 7 }
  0x6d   : > { %s623_s30 = scalar_lea.vmem %s2898_s28, %s1847_s29  ;;  %v634_v7 = vpack.c.bf16 %v633_v5, %v633_v5  ;;  %s2421_s18 = smov [#allocation14]  }
  0x6e   : > { %v2664_v6 = vld [vmem:[%s623_s30] sm:$0xff]  ;;  %s2319_s17 = sshll.u32 %s2421_s18, 4  ;;  %s2320_s17 = int_to_ptr.vmem [resolvable:$false] %s2319_s17 }
  0x6f   : > { %v743_v8 = vpack.c.bf16 %v2664_v6, %v2664_v6  ;;  %1935 = vmatmul.mubr.msk.bf16.vlgmr.msra.gmra.mxu0 %vm658_vm1, %v634_v7  ;;  %s2321_s24 = scalar_lea.vmem %s2320_s17, 256 }
  0x70   : > { %1948 = vmatprep.mubr.msk.bf16.mxu0 %vm2413_vm0, %v2412_v0 }
  0x71   : > { %1943 = vmatmul.mubr.msk.bf16.vlgmr.msra.gmra.mxu1 %vm658_vm1, %v743_v8 }
  0x72   : > { %1954 = vmatprep.mubr.msk.bf16.mxu1 %vm2413_vm0, %v2412_v0 }
 0x12f   : > { %v696_v11 = vpop.f32.mrf.mxu0 }
 0x130   : > { %v697_v12 = vadd.f32 %v1849_v9, %v696_v11 }
 0x131   : > { %v805_v13 = vpop.f32.mrf.mxu1  ;;  %v1936_v14 = vpop.f32.mrf.mxu0 }
 0x132   : > { %v806_v15 = vadd.f32 %v1854_v10, %v805_v13  ;;  %v2682_v16 = vpack.c.bf16 %v697_v12, %v697_v12 }
 0x133   : > { %v1944_v17 = vpop.f32.mrf.mxu1  ;;  %v699_v19 = vpop.f32.mrf.mxu0 }
 0x134   : > { %v811_v18 = vpack.c.bf16 %v806_v15, %v806_v15  ;;  %704 = vst.msk [vmem:[#allocation2] sm:$0xf] %vm703_vm2, %v2682_v16  ;;  %732 = vrot.lane.b32.xlu1 %v2682_v16, %s2414_s21  ;;  %712 = vrot.lane.b32.xlu0 %v2682_v16, %s2415_s20 }
 0x135   : > { %v808_v20 = vpop.f32.mrf.mxu1  ;;  %v1937_v21 = vpop.f32.mrf.mxu0 }
 0x136   : > { %813 = vst.msk [vmem:[#allocation4] sm:$0xf] %vm703_vm2, %v811_v18 }
 0x137   : > { %v1945_v22 = vpop.f32.mrf.mxu1 }
 0x138   : > { %817 = vrot.lane.b32.xlu1 %v811_v18, %s2415_s20  ;;  %722 = vrot.lane.b32.xlu0 %v2682_v16, %s2416_s27 }
 0x13b   : > { %v836_v23 = vld [vmem:[#allocation2] sm:$0xf] }
 0x13c   : > { %827 = vrot.lane.b32.xlu1 %v811_v18, %s2414_s21  ;;  %822 = vrot.lane.b32.xlu0 %v811_v18, %s2416_s27  ;;  %v849_v24 = vsel %vm844_vm3, %v836_v23, 0 }
 0x13d   : > { %1947 = vmatpush3.bf16.xpose.msra.mxu0 %v849_v24  ;;  %v832_v25 = vld [vmem:[#allocation4] sm:$0xf] }
 0x13e   : > { %1958 = vmatprep.subr.bf16.mxu0 %v2412_v0 }
 0x144   : > { %1949 = vmatmul.mubr.msk.bf16.vlgmr.msra.gmra.mxu0 %vm844_vm3, %v832_v25 }
 0x145   : > { %1960 = vmatprep.mubr.msk.bf16.mxu0 %vm2413_vm0, %v2412_v0 }
 0x1a6   : > { %v733_v26 = vpop.permute.xlu1 %732  ;;  %v713_v27 = vpop.permute.xlu0 %712 }
 0x1a7   : > { %736 = vst.msk [vmem:[#allocation2 + $0xc] sm:$0xf] %vm703_vm2, %v733_v26  ;;  %716 = vst.msk [vmem:[#allocation2 + $0x4] sm:$0xf] %vm703_vm2, %v713_v27 }
 0x1aa   : > { %v818_v28 = vpop.permute.xlu1 %817  ;;  %v723_v29 = vpop.permute.xlu0 %722 }
 0x1ab   : > { %821 = vst.msk [vmem:[#allocation4 + $0x4] sm:$0xf] %vm703_vm2, %v818_v28  ;;  %726 = vst.msk [vmem:[#allocation2 + $0x8] sm:$0xf] %vm703_vm2, %v723_v29 }
 0x1ae   : > { %v828_v30 = vpop.permute.xlu1 %827  ;;  %v823_v31 = vpop.permute.xlu0 %822  ;;  %v837_v32 = vld [vmem:[#allocation2 + $0x4] sm:$0xf]  ;;  %v839_v37 = vld [vmem:[#allocation2 + $0xc] sm:$0xf] }
 0x1af   : > { %831 = vst.msk [vmem:[#allocation4 + $0xc] sm:$0xf] %vm703_vm2, %v828_v30  ;;  %826 = vst.msk [vmem:[#allocation4 + $0x8] sm:$0xf] %vm703_vm2, %v823_v31  ;;  %v895_v33 = vsel %vm844_vm3, %v837_v32, 0  ;;  %v987_v38 = vsel %vm844_vm3, %v839_v37, 0 }
 0x1b0   : > { %1953 = vmatpush3.bf16.xpose.msra.mxu1 %v895_v33 }
 0x1b1   : > { %1964 = vmatprep.subr.bf16.mxu1 %v2412_v0 }
 0x1b2   : > { %v838_v34 = vld [vmem:[#allocation2 + $0x8] sm:$0xf]  ;;  %v833_v36 = vld [vmem:[#allocation4 + $0x4] sm:$0xf] }
 0x1b3   : > { %v941_v35 = vsel %vm844_vm3, %v838_v34, 0 }
 0x1b4   : > { %1959 = vmatpush3.bf16.xpose.msra.mxu0 %v941_v35 }
 0x1b5   : > { %1970 = vmatprep.subr.bf16.mxu0 %v2412_v0 }
 0x1b6   : > { %v834_v39 = vld [vmem:[#allocation4 + $0x8] sm:$0xf]  ;;  %v835_v40 = vld [vmem:[#allocation4 + $0xc] sm:$0xf] }
 0x1b7   : > { %1955 = vmatmul.mubr.msk.bf16.vlgmr.msra.gmra.mxu1 %vm844_vm3, %v833_v36  ;;  %v1266_v36 = vld [vmem:[#allocation8] sm:$0xf] }
 0x1b8   : > { %1965 = vmatpush3.bf16.xpose.msra.mxu1 %v987_v38  ;;  %1966 = vmatprep.mubr.msk.bf16.mxu1 %vm2413_vm0, %v2412_v0 }
 0x1b9   : > { %1976 = vmatprep.subr.bf16.mxu1 %v2412_v0 }
 0x1bb   : > { %1961 = vmatmul.mubr.msk.bf16.vlgmr.msra.gmra.mxu0 %vm844_vm3, %v834_v39 }
 0x1bc   : > { %1972 = vmatprep.mubr.msk.bf16.mxu0 %vm2413_vm0, %v2412_v0 }
 0x1bf   : > { %1967 = vmatmul.mubr.msk.bf16.vlgmr.msra.gmra.mxu1 %vm844_vm3, %v835_v40 }
 0x1c0   : > { %1978 = vmatprep.mubr.msk.bf16.mxu1 %vm2413_vm0, %v2412_v0 }
 0x204   : > { %v885_v41 = vpop.f32.mrf.mxu0 }
 0x205   : > { %v1029_v42 = vsel %vm844_vm3, %v885_v41, -inf }
 0x206   : > { %1030 = vmax.xlane.f32.xlu0 %v1029_v42  ;;  %v1950_v43 = vpop.f32.mrf.mxu0  ;;  %v1274_v42 = vsel %vm1080_vm4, %v1266_v36, 0 }
 0x208   : > { %v888_v44 = vpop.f32.mrf.mxu0 }
 0x20a   : > { %v1951_v45 = vpop.f32.mrf.mxu0 }
 0x277   : > { %v931_v46 = vpop.f32.mrf.mxu1 }
 0x278   : > { %v1032_v47 = vsel %vm844_vm3, %v931_v46, -inf }
 0x279   : > { %1033 = vmax.xlane.f32.xlu1 %v1032_v47  ;;  %v1956_v48 = vpop.f32.mrf.mxu1 }
 0x27b   : > { %v934_v49 = vpop.f32.mrf.mxu1  ;;  %v977_v50 = vpop.f32.mrf.mxu0 }
 0x27c   : > { %v1035_v51 = vsel %vm844_vm3, %v977_v50, -inf  ;;  %v1267_v49 = vld [vmem:[#allocation8 + $0x4] sm:$0xf] }
 0x27d   : > { %v1957_v52 = vpop.f32.mrf.mxu1  ;;  %1036 = vmax.xlane.f32.xlu0 %v1035_v51  ;;  %v1962_v53 = vpop.f32.mrf.mxu0  ;;  %v1268_v51 = vld [vmem:[#allocation8 + $0x8] sm:$0xf] }
 0x27f   : > { %v980_v54 = vpop.f32.mrf.mxu0  ;;  %v1023_v55 = vpop.f32.mrf.mxu1 }
 0x280   : > { %v1038_v56 = vsel %vm844_vm3, %v1023_v55, -inf  ;;  %v1366_v54 = vsel %vm1080_vm4, %v1268_v51, 0 }
 0x281   : > { %v1968_v57 = vpop.f32.mrf.mxu1  ;;  %1039 = vmax.xlane.f32.xlu0 %v1038_v56  ;;  %v1963_v58 = vpop.f32.mrf.mxu0 }
 0x283   : > { %v1026_v59 = vpop.f32.mrf.mxu1 }
 0x284   : > { %v1269_v59 = vld [vmem:[#allocation8 + $0xc] sm:$0xf] }
 0x285   : > { %v1969_v60 = vpop.f32.mrf.mxu1 }
 0x28a   : > { %708 = vrot.lane.b32.xlu1 %v2682_v16, %s2417_s26  ;;  %s2900_s26 = sld [smem:[#allocation30_spill]] }
 0x28f   : > { %v1031_v61 = vpop.xlane.xlu0 %1030 }
 0x290   : > { %v1041_v62 = vsub.f32 %v885_v41, %v1031_v61 }
 0x292   : > { %v1045_v63 = vmul.f32 1.442695, %v1041_v62 }
 0x294   : > { %2165 = vpow2.f32 %v1045_v63 }
 0x2a1   : > { %v2166_v1 = vpop.eup %2165 }
 0x2a2   : > { %v1053_v2 = vsel %vm844_vm3, %v2166_v1, 0.0 }
 0x2ae   : > { %1054 = vadd.xlane.f32.xlu1 %v1053_v2 }
 0x302   : > { %v1034_v3 = vpop.xlane.xlu1 %1033 }
 0x303   : > { %v1042_v4 = vsub.f32 %v931_v46, %v1034_v3 }
 0x305   : > { %v1047_v5 = vmul.f32 1.442695, %v1042_v4 }
 0x306   : > { %v709_v7 = vpop.permute.xlu1 %708  ;;  %v1037_v8 = vpop.xlane.xlu0 %1036 }
 0x307   : > { %2167 = vpow2.f32 %v1047_v5  ;;  %711 = vst.msk [vmem:[#allocation3] sm:$0xf] %vm703_vm2, %v709_v7  ;;  %v1043_v9 = vsub.f32 %v977_v50, %v1037_v8  ;;  %v1320_v50 = vsel %vm1080_vm4, %v1267_v49, 0 }
 0x309   : > { %v1049_v10 = vmul.f32 1.442695, %v1043_v9 }
 0x30a   : > { %v1040_v11 = vpop.xlane.xlu0 %1039 }
 0x30b   : > { %2169 = vpow2.f32 %v1049_v10  ;;  %v1044_v12 = vsub.f32 %v1023_v55, %v1040_v11 }
 0x30d   : > { %v1051_v13 = vmul.f32 1.442695, %v1044_v12 }
 0x30e   : > { %v840_v14 = vld [vmem:[#allocation3] sm:$0xf] }
 0x30f   : > { %2171 = vpow2.f32 %v1051_v13  ;;  %v1082_v15 = vsel %vm1080_vm4, %v840_v14, 0 }
 0x310   : > { %1971 = vmatpush3.bf16.msra.mxu0 %v1082_v15 }
 0x311   : > { %1982 = vmatprep.subr.bf16.mxu0 %v2412_v0 }
 0x314   : > { %v2168_v17 = vpop.eup %2167 }
 0x315   : > { %v1056_v18 = vsel %vm844_vm3, %v2168_v17, 0.0 }
 0x316   : > { %1057 = vadd.xlane.f32.xlu0 %v1056_v18 }
 0x318   : > { %v2170_v19 = vpop.eup %2169 }
 0x319   : > { %v1059_v20 = vsel %vm844_vm3, %v2170_v19, 0.0 }
 0x31a   : > { %1060 = vadd.xlane.f32.xlu1 %v1059_v20 }
 0x31c   : > { %v2172_v21 = vpop.eup %2171 }
 0x31d   : > { %v1062_v22 = vsel %vm844_vm3, %v2172_v21, 0.0 }
 0x31e   : > { %1063 = vadd.xlane.f32.xlu0 %v1062_v22 }
 0x32b   : > { %727 = vrot.lane.b32.xlu1 %v2682_v16, %s2418_s15  ;;  %s2901_s15 = smov %s2900_s26 }
 0x32f   : > { %737 = vrot.lane.b32.xlu1 %v2682_v16, %s2419_s19  ;;  %s1696_s19 = scalar_lea.hbm %s2900_s26, %s1887_s6 }
 0x334   : > { %717 = vrot.lane.b32.xlu0 %v2682_v16, %s2420_s23  ;;  %s614_s23 = sand.u32 1, %s2387_s22  }
 0x335   : > { %s1846_s28 = sshll.u32 %s614_s23, 3  ;;  %s1684_s1 = scalar_lea.sflag [#allocation7], %s614_s23 }
 0x336   : > { %s616_s29 = scalar_lea.vmem [#allocation14], %s1846_s28 }
 0x337   : > { %v1055_v23 = vpop.xlane.xlu1 %1054  ;;  %s1698_s21 = sshll.u32 %s616_s29, 4  ;;  %s1699_s21 = int_to_ptr.vmem [resolvable:$true] %s1698_s21 }
 0x338   : > { %2173 = vrcp.f32 %v1055_v23  ;;  %s2315_s30 = scalar_lea.vmem %s1699_s21, 128  ;;  %p2322_p0 = scmp.lt.s32.totalorder %s1699_s21, %s2320_s17 }
 0x339   : > { %p2316_p10 = scmp.ne.s32.totalorder %s1699_s21, %s2315_s30  ;;  %p2323_p5 = scmp.lt.s32.totalorder %s2321_s24, %s2315_s30 }
 0x33b   : > { %p2317_p11 = pnand %p2316_p10, %p2547_p4  ;;  %p2324_p3 = por %p2323_p5, %p2322_p0 }
 0x33d   : > { %p2318_p13 = pneg %p2317_p11 }
 0x33f   : > { %p2325_p6 = pnand %p2324_p3, %p2318_p13 }
 0x345   : > { %v2174_v24 = vpop.eup %2173 }
 0x346   : > { %v1069_v25 = vmul.f32 %v2174_v24, %v2166_v1  ;;  %v1412_v1 = vsel %vm1080_vm4, %v1269_v59, 0  ;;  %v2164_v59 = vld [vmem:[%s2863_s10] sm:$0xff]  }
 0x348   : > { %v1073_v26 = vpack.c.bf16 %v1069_v25, %v1069_v25 }
 0x34a   : > { %1973 = vmatmul.mubr.msk.bf16.vlgmr.msra.gmra.mxu0 %vm844_vm3, %v1073_v26 }
 0x34b   : > { %1984 = vmatprep.mubr.msk.bf16.mxu0 %vm2413_vm0, %v2412_v0 }
 0x39f   : > { %v1058_v27 = vpop.xlane.xlu0 %1057 }
 0x3a0   : > { %2175 = vrcp.f32 %v1058_v27 }
 0x3a3   : > { %v1061_v28 = vpop.xlane.xlu1 %1060 }
 0x3a4   : > { %2177 = vrcp.f32 %v1061_v28 }
 0x3a7   : > { %v728_v29 = vpop.permute.xlu1 %727  ;;  %v1064_v30 = vpop.xlane.xlu0 %1063 }
 0x3a8   : > { %731 = vst.msk [vmem:[#allocation3 + $0x8] sm:$0xf] %vm703_vm2, %v728_v29  ;;  %2179 = vrcp.f32 %v1064_v30 }
 0x3ab   : > { %v738_v16 = vpop.permute.xlu1 %737  ;;  %v718_v31 = vpop.permute.xlu0 %717 }
 0x3ac   : > { %741 = vst.msk [vmem:[#allocation3 + $0xc] sm:$0xf] %vm703_vm2, %v738_v16  ;;  %721 = vst.msk [vmem:[#allocation3 + $0x4] sm:$0xf] %vm703_vm2, %v718_v31 }
 0x3ad   : > { %v2176_v32 = vpop.eup %2175 }
 0x3ae   : > { %v1070_v38 = vmul.f32 %v2176_v32, %v2168_v17  ;;  %v1871_v32 = vld [vmem:[#allocation10] ss:$0 sm:$0xff] }
 0x3af   : > { %v842_v33 = vld [vmem:[#allocation3 + $0x8] sm:$0xf] }
 0x3b0   : > { %v1174_v34 = vsel %vm1080_vm4, %v842_v33, 0  ;;  %v1074_v44 = vpack.c.bf16 %v1070_v38, %v1070_v38 }
 0x3b1   : > { %v2178_v35 = vpop.eup %2177  ;;  %1983 = vmatpush3.bf16.msra.mxu0 %v1174_v34 }
 0x3b2   : > { %v1071_v37 = vmul.f32 %v2178_v35, %v2170_v19  ;;  %1994 = vmatprep.subr.bf16.mxu0 %v2412_v0 }
 0x3b3   : > { %v841_v39 = vld [vmem:[#allocation3 + $0x4] sm:$0xf]  ;;  %v843_v43 = vld [vmem:[#allocation3 + $0xc] sm:$0xf] }
 0x3b4   : > { %v1128_v40 = vsel %vm1080_vm4, %v841_v39, 0  ;;  %v1075_v41 = vpack.c.bf16 %v1071_v37, %v1071_v37  ;;  %v1220_v46 = vsel %vm1080_vm4, %v843_v43, 0 }
 0x3b5   : > { %1977 = vmatpush3.bf16.msra.mxu1 %v1128_v40  ;;  %v2180_v45 = vpop.eup %2179 }
 0x3b6   : > { %1985 = vmatmul.mubr.msk.bf16.vlgmr.msra.gmra.mxu0 %vm844_vm3, %v1075_v41  ;;  %1988 = vmatprep.subr.bf16.mxu1 %v2412_v0  ;;  %v1072_v47 = vmul.f32 %v2180_v45, %v2172_v21  ;;  %v2159_v45 = vld [vmem:[#allocation11 + $0x8] sm:$0xff]  }
 0x3b7   : > { %1995 = vmatpush3.bf16.msra.mxu0 %v1274_v42  ;;  %1996 = vmatprep.mubr.msk.bf16.mxu0 %vm2413_vm0, %v2412_v0 }
 0x3b8   : > { %1979 = vmatmul.mubr.msk.bf16.vlgmr.msra.gmra.mxu1 %vm844_vm3, %v1074_v44  ;;  %2006 = vmatprep.subr.bf16.mxu0 %v2412_v0  ;;  %v1076_v48 = vpack.c.bf16 %v1072_v47, %v1072_v47  ;;  %v2162_v47 = vld [vmem:[%s2863_s10 + $0x10] sm:$0xff]  }
 0x3b9   : > { %1989 = vmatpush3.bf16.msra.mxu1 %v1220_v46  ;;  %1990 = vmatprep.mubr.msk.bf16.mxu1 %vm2413_vm0, %v2412_v0  ;;  %v2160_v46 = vld [vmem:[#allocation11] sm:$0xff]  }
 0x3ba   : > { %2000 = vmatprep.subr.bf16.mxu1 %v2412_v0 }
 0x3c0   : > { %1991 = vmatmul.mubr.msk.bf16.vlgmr.msra.gmra.mxu1 %vm844_vm3, %v1076_v48 }
 0x3c1   : > { %2002 = vmatprep.mubr.msk.bf16.mxu1 %vm2413_vm0, %v2412_v0  ;;  %2001 = vmatpush3.bf16.msra.mxu1 %v1320_v50 }
 0x3c2   : > { %2012 = vmatprep.subr.bf16.mxu1 %v2412_v0 }
 0x40a   : > { %v1118_v52 = vpop.f32.mrf.mxu0 }
 0x40b   : > { %v1262_v53 = vpack.c.bf16 %v1118_v52, %v1118_v52  ;;  %v1872_v52 = vld [vmem:[%s2865_s12] ss:$0 sm:$0xff] }
 0x40c   : > { %v1974_v55 = vpop.f32.mrf.mxu0 }
 0x40d   : > { %1997 = vmatmul.mubr.msk.bf16.vlgmr.msra.gmra.mxu0 %vm844_vm3, %v1262_v53 }
 0x40e   : > { %v1121_v56 = vpop.f32.mrf.mxu0  ;;  %2007 = vmatpush3.bf16.msra.mxu0 %v1366_v54  ;;  %2008 = vmatprep.mubr.msk.bf16.mxu0 %vm2413_vm0, %v2412_v0  ;;  %v1873_v54 = vld [vmem:[%s2866_s13] ss:$0 sm:$0xff] }
 0x40f   : > { %2018 = vmatprep.subr.bf16.mxu0 %v2412_v0 }
 0x410   : > { %v1975_v57 = vpop.f32.mrf.mxu0 }
 0x476   : > { %v1210_v58 = vpop.f32.mrf.mxu0 }
 0x477   : > { %v1264_v60 = vpack.c.bf16 %v1210_v58, %v1210_v58  ;;  %v2163_v58 = vld [vmem:[%s2863_s10 + $0x8] sm:$0xff]  }
 0x478   : > { %v1164_v61 = vpop.f32.mrf.mxu1  ;;  %v1986_v62 = vpop.f32.mrf.mxu0 }
 0x479   : > { %v1263_v63 = vpack.c.bf16 %v1164_v61, %v1164_v61  ;;  %2009 = vmatmul.mubr.msk.bf16.vlgmr.msra.gmra.mxu0 %vm844_vm3, %v1264_v60  ;;  %v1874_v60 = vld [vmem:[#allocation13] ss:$0 sm:$0xff] }
 0x47a   : > { %v1980_v2 = vpop.f32.mrf.mxu1  ;;  %v1213_v3 = vpop.f32.mrf.mxu0  ;;  %2022 = vmatprep.mubr.msk.bf16.mxu0 %vm2413_vm0, %v2412_v0  ;;  %2019 = vmatpush3.bf16.msra.mxu0 %v2159_v45 }
 0x47b   : > { %2003 = vmatmul.mubr.msk.bf16.vlgmr.msra.gmra.mxu1 %vm844_vm3, %v1263_v63  ;;  %2020 = vmatprep.subr.bf16.mxu0 %v2412_v0 }
 0x47c   : > { %v1167_v4 = vpop.f32.mrf.mxu1  ;;  %v1987_v5 = vpop.f32.mrf.mxu0  ;;  %2013 = vmatpush3.bf16.msra.mxu1 %v1412_v1  ;;  %2014 = vmatprep.mubr.msk.bf16.mxu1 %vm2413_vm0, %v2412_v0 }
 0x47d   : > { %2026 = vmatprep.subr.bf16.mxu1 %v2412_v0  ;;  %v1878_v5 = vld [vmem:[%s2864_s11] ss:$0 sm:$0xff] }
 0x47e   : > { %v1981_v7 = vpop.f32.mrf.mxu1  ;;  %2021 = vmatpush3.bf16.msra.mxu0 %v2160_v46 }
 0x480   : > { %v1256_v8 = vpop.f32.mrf.mxu1 }
 0x481   : > { %v1265_v9 = vpack.c.bf16 %v1256_v8, %v1256_v8 }
 0x482   : > { %v1992_v10 = vpop.f32.mrf.mxu1 }
 0x483   : > { %2015 = vmatmul.mubr.msk.bf16.vlgmr.msra.gmra.mxu1 %vm844_vm3, %v1265_v9 }
 0x484   : > { %v1259_v11 = vpop.f32.mrf.mxu1  ;;  %2034 = vmatprep.mubr.msk.bf16.mxu1 %vm2413_vm0, %v2412_v0 }
 0x486   : > { %v1993_v12 = vpop.f32.mrf.mxu1 }
 0x4cd   : > { %v1310_v13 = vpop.f32.mrf.mxu0 }
 0x4ce   : > { %v1454_v24 = vsel %vm658_vm1, %v1310_v13, 0.0 }
 0x4cf   : > { %v1998_v14 = vpop.f32.mrf.mxu0 }
 0x4d1   : > { %v1313_v15 = vpop.f32.mrf.mxu0 }
 0x4d3   : > { %v1999_v17 = vpop.f32.mrf.mxu0 }
 0x539   : > { %v1402_v18 = vpop.f32.mrf.mxu0 }
 0x53a   : > { %v1457_v29 = vsel %vm658_vm1, %v1402_v18, 0.0 }
 0x53b   : > { %v1356_v19 = vpop.f32.mrf.mxu1  ;;  %v2010_v20 = vpop.f32.mrf.mxu0 }
 0x53c   : > { %v1455_v21 = vsel %vm658_vm1, %v1356_v19, 0.0 }
 0x53d   : > { %v2004_v22 = vpop.f32.mrf.mxu1  ;;  %v1405_v23 = vpop.f32.mrf.mxu0  ;;  %v1456_v25 = vadd.f32 %v1455_v21, %v1454_v24 }
 0x53e   : > { %v1884_v23 = vld [vmem:[%s2867_s14] ss:$0 sm:$0xff] }
 0x53f   : > { %v1359_v26 = vpop.f32.mrf.mxu1  ;;  %v2011_v27 = vpop.f32.mrf.mxu0  ;;  %v1458_v16 = vadd.f32 %v1457_v29, %v1456_v25  ;;  %v1885_v25 = vld [vmem:[%s2899_s25] ss:$0 sm:$0xff] }
 0x541   : > { %v2005_v28 = vpop.f32.mrf.mxu1 }
 0x543   : > { %v1448_v30 = vpop.f32.mrf.mxu1 }
 0x544   : > { %v1459_v31 = vsel %vm658_vm1, %v1448_v30, 0.0 }
 0x545   : > { %v1460_v33 = vadd.f32 %v1459_v31, %v1458_v16  ;;  %v2016_v34 = vpop.f32.mrf.mxu1 }
 0x547   : > { %v1468_v35 = vadd.f32 %v1871_v32, %v1460_v33  ;;  %v1451_v36 = vpop.f32.mrf.mxu1 }
 0x549   : > { %v2017_v37 = vpop.f32.mrf.mxu1  ;;  %v1469_v38 = vadd.f32 %v1468_v35, %v2664_v6  ;;  %v2161_v6 = vld [vmem:[%s2863_s10 + $0x18] sm:$0xff]  }
 0x54a   : > { %2027 = vmatpush3.bf16.msra.mxu1 %v2161_v6 }
 0x54b   : > { %v1472_v39 = vsel %vm658_vm1, %v1469_v38, 0.0  ;;  %2028 = vmatprep.subr.bf16.mxu1 %v2412_v0 }
 0x54c   : > { %1473 = vadd.xlane.f32.xlu0 %v1472_v39 }
 0x54e   : > { %2029 = vmatpush3.bf16.msra.mxu1 %v2162_v47 }
 0x54f   : > { %2030 = vmatprep.subr.bf16.mxu1 %v2412_v0 }
 0x552   : > { %2031 = vmatpush3.bf16.msra.mxu1 %v2163_v58 }
 0x553   : > { %2032 = vmatprep.subr.bf16.mxu1 %v2412_v0 }
 0x556   : > { %2033 = vmatpush3.bf16.msra.mxu1 %v2164_v59 }
 0x5d5   : > { %v1474_v40 = vpop.xlane.xlu0 %1473 }
 0x5d6   : > { %v1476_v41 = vmul.f32 0.03125, %v1474_v40 }
 0x5d8   : > { %v1477_v42 = vsub.f32 %v1469_v38, %v1476_v41 }
 0x5da   : > { %v1478_v43 = vmul.f32 %v1477_v42, %v1477_v42 }
 0x5dc   : > { %v1479_v44 = vsel %vm658_vm1, %v1478_v43, 0.0 }
 0x5dd   : > { %1480 = vadd.xlane.f32.xlu1 %v1479_v44 }
 0x666   : > { %v1481_v48 = vpop.xlane.xlu1 %1480 }
 0x667   : > { %v1482_v49 = vmul.f32 0.03125, %v1481_v48 }
 0x669   : > { %v1483_v50 = vadd.f32 1e-05, %v1482_v49 }
 0x66b   : > { %2181 = vrsqrt.f32 %v1483_v50 }
 0x678   : > { %v2182_v51 = vpop.eup %2181 }
 0x679   : > { %v1485_v53 = vmul.f32 %v2182_v51, %v1477_v42 }
 0x67b   : > { %v1492_v55 = vmul.f32 %v1872_v52, %v1485_v53 }
 0x67d   : > { %v1499_v56 = vadd.f32 %v1873_v54, %v1492_v55 }
 0x67f   : > { %v1500_v57 = vpack.c.bf16 %v1499_v56, %v1499_v56 }
 0x681   : > { %2023 = vmatmul.mubr.msk.bf16.vlgmr.msra.gmra.mxu0 %vm658_vm1, %v1500_v57 }
 0x741   : > { %v1561_v61 = vpop.f32.mrf.mxu0 }
 0x742   : > { %v1562_v62 = vadd.f32 %v1874_v60, %v1561_v61 }
 0x743   : > { %v2024_v63 = vpop.f32.mrf.mxu0 }
 0x744   : > { %v1567_v1 = vmax.f32 %v1562_v62, 0.0 }
 0x745   : > { %v1564_v2 = vpop.f32.mrf.mxu0 }
 0x746   : > { %v1568_v3 = vpack.c.bf16 %v1567_v1, %v1567_v1 }
 0x747   : > { %v2025_v4 = vpop.f32.mrf.mxu0 }
 0x748   : > { %2035 = vmatmul.mubr.msk.bf16.vlgmr.msra.gmra.mxu1 %vm1608_vm5, %v1568_v3 }
 0x808   : > { %v1646_v0 = vpop.f32.mrf.mxu1 }
 0x809   : > { %v1647_v7 = vadd.f32 %v1878_v5, %v1646_v0 }
 0x80a   : > { %v2036_v8 = vpop.f32.mrf.mxu1 }
 0x80b   : > { %v1652_v9 = vadd.f32 %v1647_v7, %v1499_v56 }
 0x80c   : > { %v1649_v10 = vpop.f32.mrf.mxu1 }
 0x80d   : > { %v1655_v11 = vsel %vm658_vm1, %v1652_v9, 0.0 }
 0x80e   : > { %1656 = vadd.xlane.f32.xlu0 %v1655_v11  ;;  %v2037_v12 = vpop.f32.mrf.mxu1 }
 0x897   : > { %v1657_v13 = vpop.xlane.xlu0 %1656 }
 0x898   : > { %v1658_v14 = vmul.f32 0.03125, %v1657_v13 }
 0x89a   : > { %v1659_v15 = vsub.f32 %v1652_v9, %v1658_v14 }
 0x89c   : > { %v1660_v17 = vmul.f32 %v1659_v15, %v1659_v15 }
 0x89e   : > { %v1661_v18 = vsel %vm658_vm1, %v1660_v17, 0.0 }
 0x89f   : > { %1662 = vadd.xlane.f32.xlu0 %v1661_v18 }
 0x928   : > { %v1663_v19 = vpop.xlane.xlu0 %1662 }
 0x929   : > { %v1664_v20 = vmul.f32 0.03125, %v1663_v19 }
 0x92b   : > { %v1665_v21 = vadd.f32 1e-05, %v1664_v20 }
 0x92d   : > { %2183 = vrsqrt.f32 %v1665_v21 }
 0x93a   : > { %v2184_v22 = vpop.eup %2183 }
 0x93b   : > { %v1667_v24 = vmul.f32 %v2184_v22, %v1659_v15 }
 0x93d   : > { %v1674_v26 = vmul.f32 %v1884_v23, %v1667_v24 }
 0x93f   : > { %v1681_v27 = vadd.f32 %v1885_v25, %v1674_v26 }
 0x941   : > { %1682 = vst.msk [vmem:[%s616_s29] sm:$0xff] %vm658_vm1, %v1681_v27 }
 0x942   : > { %2328 = shalt.err (!%p2325_p6)
}
 0x943   : > { %s2329_s28 = scalar_lea.hbm %s1696_s19, 128  ;;  %s2333_s25 = scalar_lea.hbm %s2901_s15, 256 }
 0x944   : > { %p2330_p7 = scmp.ne.s32.totalorder %s1696_s19, %s2329_s28  ;;  %p2334_p12 = scmp.lt.s32.totalorder %s1696_s19, %s2901_s15 }
 0x945   : > { %p2335_p1 = scmp.lt.s32.totalorder %s2333_s25, %s2329_s28 }
 0x946   : > { %p2331_p9 = pnand %p2330_p7, %p2547_p4 }
 0x947   : > { %p2336_p8 = por %p2335_p1, %p2334_p12 }
 0x948   : > { %p2332_p2 = pneg %p2331_p9 }
 0x94a   : > { %p2337_p10 = pnand %p2336_p8, %p2332_p2 }
 0x94c   : > { %2340 = shalt.err (!%p2337_p10)
}
 0x94d   : > { %2058 = dma.vmem_to_hbm [thread:$0]  (%p2547_p4), %s1699_s21, 128, %s1696_s19, %s1684_s1  }
 0x94e PF: > { %s2902_s20 = sld [smem:[#allocation22_spill]] }
 0x94f   : > { %s2903_s27 = sld [smem:[#allocation19_spill]] }
 0x950   : > { %s2904_s26 = sld [smem:[#allocation24_spill]] }
 0x954   : > { %p2090_p11 = scmp.ge.s32.totalorder %s2902_s20, 2 }
 0x955   : > { %s1710_s30 = sand.u32 1, %s2903_s27  }
 0x956   : > { %p2905_p13 = scmp.ne.s32.totalorder %s2904_s26, 0  ;;  %s1711_s18 = scalar_lea.sflag [#allocation7], %s1710_s30 }
 0x958   : > { %p2077_p0 = pnand %p2090_p11, %p2905_p13 }
 0x95a   : > { %p2078_p5 = pneg %p2077_p0 }
 0x95c   : > { %2378 = dma.done.wait (%p2078_p5), %s1711_s18, 128  }
 0x95d   : > { %2380 = vsyncadd (%p2078_p5), %s1711_s18, 4294967168  ;;  %s32_s26 = sadd.s32 1, %s2902_s20   ;;  %s2906_s17 = sld [smem:[#allocation20_spill]] }
 0x95e   : > { %p29_p3 = scmp.ge.s32.totalorder %s32_s26, 4   ;;  %s2907_s23 = sld [smem:[#allocation25_spill]] }
 0x95f   : > { %s2908_s24 = sld [smem:[#allocation21_spill]]  ;;  %s2910_s21 = smov %s2387_s22 }
 0x960   : > { %s2909_s25 = sld [smem:[#allocation23_spill]]  ;;  %31 = sbr.rel (!%p29_p3) target bundleno = 13 (0xd), region = 156 }
 0x963   : > { %s2911_s22 = smov %s2906_s17 }
 0x965   :  { %1716 = vsyncpa [#allocation6], 1 }
 0x966   :  { %1718 = vsyncpa [#allocation6 + $0x1], 1 }
 0x967   :  { %1719 = vsyncpa [#allocation9], 1 }
 0x968   :  { %1720 = vsyncpa [#allocation12], 1 }
 0x969   :  { %1721 = vsyncpa [#allocation7], 1 }
 0x96a   :  { %1723 = vsyncpa [#allocation7 + $0x1], 1 }

</bundles_post_ra>
